<compile_context>
chip_gen: v7x
topology: tpu7x:2x2x1
jax: 0.10.0
libtpu: 0.0.40
codegen_flags: <defaults>
</compile_context>

<pallas_src>
import jax
import jax.numpy as jnp
from jax import lax
from jax.experimental import pallas as pl
from jax.experimental.pallas import tpu as pltpu

EPS = 1e-5
LANE = 128


def _round_up(x, m):
    return ((x + m - 1) // m) * m


# ------------------------------- in-kernel helpers ------------------------------------
def _store_padded(pad_ref, interior):
    """Write `interior` (H,W,C) into pad_ref (H+2,W+2,C) with a zero 1-px border.

    Only the border rows/columns are zeroed (no full zero-fill of the scratch)."""
    Hp, Wp, C = pad_ref.shape
    H, W = Hp - 2, Wp - 2
    z_row = jnp.zeros((1, Wp, C), jnp.float32)
    pad_ref[0:1] = z_row
    pad_ref[Hp - 1:Hp] = z_row
    z_col = jnp.zeros((H, 1, C), jnp.float32)
    pad_ref[1:Hp - 1, 0:1, :] = z_col
    pad_ref[1:Hp - 1, Wp - 1:Wp, :] = z_col
    pad_ref[1:Hp - 1, 1:Wp - 1, :] = interior


def _conv3x3(xpad, w_ref, H, W, cout):
    """3x3/s1 conv of xpad (H+2,W+2,Cin) with w_ref (9,Cin,Cout) -> (H*W,Cout) f32.

    The 3 W-shifted views are hoisted (one relayout each); dy shifts are free
    sublane-aligned row offsets of the flattened matrix; 9 MXU dots accumulate in f32."""
    Hp, Wp, cin = xpad.shape
    acc = jnp.zeros((H * W, cout), jnp.float32)
    for dx in range(3):
        col = xpad[:, dx:dx + W, :].reshape(Hp * W, cin)
        for dy in range(3):
            patch = col[dy * W: dy * W + H * W, :]
            acc = acc + jnp.dot(patch, w_ref[dy * 3 + dx],
                                preferred_element_type=jnp.float32)
    return acc


def _channel_stats(acc):
    """Per-channel [sum; sum of squares] of acc (M, C) -> (2, C)."""
    s = jnp.sum(acc, axis=0, keepdims=True)
    sq = jnp.sum(acc * acc, axis=0, keepdims=True)
    return jnp.concatenate([s, sq], axis=0)


# ------------------------------------ kernels ------------------------------------------
def _conv1_kernel(x_ref, w1_ref, y1_ref, s1_ref, xpad_ref):
    # x_ref:(1,H,W,Cin)  w1_ref:(9,Cin,C1p)  y1_ref:(1,H,W,C1p)  s1_ref:(1,2,C1p)
    _, H, W, _ = x_ref.shape
    C1p = w1_ref.shape[-1]
    _store_padded(xpad_ref, x_ref[0])
    acc = _conv3x3(xpad_ref[...], w1_ref, H, W, C1p)           # (H*W, C1p) f32
    y1_ref[...] = acc.reshape(1, H, W, C1p)
    s1_ref[0] = _channel_stats(acc)


def _conv2_kernel(y1_ref, sc1_ref, sh1_ref, w2_ref, y2_ref, s2_ref, ypad_ref):
    # y1_ref:(1,H,W,C1p)  sc1/sh1:(1,C1p)  w2_ref:(9,C1p,C2p)  y2_ref:(1,H,W,C2p)
    _, H, W, _ = y1_ref.shape
    C2p = w2_ref.shape[-1]
    # fused BN1 + ReLU: one multiply-add + max over the tile
    a = jnp.maximum(y1_ref[0] * sc1_ref[...] + sh1_ref[...], 0.0)
    _store_padded(ypad_ref, a)
    acc = _conv3x3(ypad_ref[...], w2_ref, H, W, C2p)
    y2_ref[...] = acc.reshape(1, H, W, C2p)
    s2_ref[0] = _channel_stats(acc)


def _bn_relu_kernel(y2_ref, sc2_ref, sh2_ref, o_ref):
    o_ref[...] = jnp.maximum(y2_ref[...] * sc2_ref[...] + sh2_ref[...], 0.0)


# ------------------------------------ wrapper -------------------------------------------
def _bn_scale_shift(stats, gamma, beta, count):
    """stats: (G,2,Cp) per-tile [sum; sumsq]. Returns (1,Cp) fused scale and shift."""
    total = jnp.sum(stats, axis=0)                               # (2, Cp)
    mean = total[0] / count
    var = jnp.maximum(total[1] / count - mean * mean, 0.0)       # biased variance
    scale = gamma * lax.rsqrt(var + EPS)
    shift = beta - mean * scale
    return scale.reshape(1, -1), shift.reshape(1, -1)


def double_conv_block_a(x_nchw, params):
    """x_nchw: (N, Cin, H, W) float32. Returns (N, C2, H, W)."""
    w1, b1, g1, t1, w2, b2, g2, t2 = params
    del b1, b2   # conv bias is cancelled exactly by train-mode BN mean subtraction
    x = jnp.transpose(x_nchw, (0, 2, 3, 1)).astype(jnp.float32)  # NCHW -> NHWC
    N, H, W, Cin = x.shape
    C1, C2 = w1.shape[-1], w2.shape[-1]
    C1p, C2p = _round_up(C1, LANE), _round_up(C2, LANE)          # lane-dense channels

    w1p = jnp.pad(w1, ((0, 0), (0, 0), (0, 0), (0, C1p - C1))).reshape(9, Cin, C1p)
    w2p = jnp.pad(w2, ((0, 0), (0, 0), (0, C1p - C1), (0, C2p - C2))).reshape(9, C1p, C2p)
    g1p, t1p = jnp.pad(g1, (0, C1p - C1)), jnp.pad(t1, (0, C1p - C1))
    g2p, t2p = jnp.pad(g2, (0, C2p - C2)), jnp.pad(t2, (0, C2p - C2))

    cparams = pltpu.CompilerParams(dimension_semantics=("parallel",),
                                   vmem_limit_bytes=32 * 1024 * 1024)
    count = jnp.float32(N * H * W)

    # ---- pass 1: conv1 + per-tile BN1 statistics -------------------------------------
    y1_raw, s1 = pl.pallas_call(
        _conv1_kernel,
        grid=(N,),
        in_specs=[pl.BlockSpec((1, H, W, Cin), lambda n: (n, 0, 0, 0)),
                  pl.BlockSpec((9, Cin, C1p), lambda n: (0, 0, 0))],
        out_specs=[pl.BlockSpec((1, H, W, C1p), lambda n: (n, 0, 0, 0)),
                   pl.BlockSpec((1, 2, C1p), lambda n: (n, 0, 0))],
        out_shape=[jax.ShapeDtypeStruct((N, H, W, C1p), jnp.float32),
                   jax.ShapeDtypeStruct((N, 2, C1p), jnp.float32)],
        scratch_shapes=[pltpu.VMEM((H + 2, W + 2, Cin), jnp.float32)],
        compiler_params=cparams,
    )(x, w1p)

    scale1, shift1 = _bn_scale_shift(s1, g1p, t1p, count)

    # ---- pass 2: fused BN1+ReLU, conv2, per-tile BN2 statistics ----------------------
    y2_raw, s2 = pl.pallas_call(
        _conv2_kernel,
        grid=(N,),
        in_specs=[pl.BlockSpec((1, H, W, C1p), lambda n: (n, 0, 0, 0)),
                  pl.BlockSpec((1, C1p), lambda n: (0, 0)),
                  pl.BlockSpec((1, C1p), lambda n: (0, 0)),
                  pl.BlockSpec((9, C1p, C2p), lambda n: (0, 0, 0))],
        out_specs=[pl.BlockSpec((1, H, W, C2p), lambda n: (n, 0, 0, 0)),
                   pl.BlockSpec((1, 2, C2p), lambda n: (n, 0, 0))],
        out_shape=[jax.ShapeDtypeStruct((N, H, W, C2p), jnp.float32),
                   jax.ShapeDtypeStruct((N, 2, C2p), jnp.float32)],
        scratch_shapes=[pltpu.VMEM((H + 2, W + 2, C1p), jnp.float32)],
        compiler_params=cparams,
    )(y1_raw, scale1, shift1, w2p)

    scale2, shift2 = _bn_scale_shift(s2, g2p, t2p, count)

    # ---- pass 3: fused BN2 + ReLU ----------------------------------------------------
    out_p = pl.pallas_call(
        _bn_relu_kernel,
        grid=(N,),
        in_specs=[pl.BlockSpec((1, H, W, C2p), lambda n: (n, 0, 0, 0)),
                  pl.BlockSpec((1, C2p), lambda n: (0, 0)),
                  pl.BlockSpec((1, C2p), lambda n: (0, 0))],
        out_specs=pl.BlockSpec((1, H, W, C2p), lambda n: (n, 0, 0, 0)),
        out_shape=jax.ShapeDtypeStruct((N, H, W, C2p), jnp.float32),
        compiler_params=cparams,
    )(y2_raw, scale2, shift2)

    return jnp.transpose(out_p[..., :C2], (0, 3, 1, 2))           # NHWC -> NCHW


# ------------------------------ pure-JAX reference ------------------------------------
def _ref_block(x_nhwc, w, b, g, t):
    y = lax.conv_general_dilated(
        x_nhwc, w, window_strides=(1, 1), padding=((1, 1), (1, 1)),
        dimension_numbers=('NHWC', 'HWIO', 'NHWC')) + b
    mean = jnp.mean(y, axis=(0, 1, 2), keepdims=True)
    var = jnp.mean((y - mean) ** 2, axis=(0, 1, 2), keepdims=True)   # biased variance
    y = (y - mean) * lax.rsqrt(var + EPS) * g + t
    return jnp.maximum(y, 0.0)


def double_conv_block_a_ref(x_nchw, params):
    w1, b1, g1, t1, w2, b2, g2, t2 = params
    x = jnp.transpose(x_nchw, (0, 2, 3, 1))
    y = _ref_block(x, w1, b1, g1, t1)
    y = _ref_block(y, w2, b2, g2, t2)
    return jnp.transpose(y, (0, 3, 1, 2))


if __name__ == "__main__":
    key = jax.random.PRNGKey(0)
    N, Cin, H, W = 2, 4, 16, 16
    C1, C2 = 8, 8

    ks = jax.random.split(key, 9)
    x = jax.random.normal(ks[0], (N, Cin, H, W), jnp.float32)

    # Deterministic synthetic parameters (HWIO weights, per-channel bias / gamma / beta).
    w1 = 0.2 * jax.random.normal(ks[1], (3, 3, Cin, C1), jnp.float32)
    b1 = 0.1 * jax.random.normal(ks[2], (C1,), jnp.float32)
    g1 = 1.0 + 0.1 * jax.random.normal(ks[3], (C1,), jnp.float32)
    t1 = 0.1 * jax.random.normal(ks[4], (C1,), jnp.float32)
    w2 = 0.2 * jax.random.normal(ks[5], (3, 3, C1, C2), jnp.float32)
    b2 = 0.1 * jax.random.normal(ks[6], (C2,), jnp.float32)
    g2 = 1.0 + 0.1 * jax.random.normal(ks[7], (C2,), jnp.float32)
    t2 = 0.1 * jax.random.normal(ks[8], (C2,), jnp.float32)
    params = (w1, b1, g1, t1, w2, b2, g2, t2)

    out = jax.block_until_ready(double_conv_block_a(x, params))
    ref = jax.block_until_ready(double_conv_block_a_ref(x, params))

    assert out.shape == (N, C2, H, W), out.shape
    assert jnp.allclose(out, ref, atol=1e-3, rtol=1e-3), float(jnp.max(jnp.abs(out - ref)))
    print("KERNEL_OK")
</pallas_src>

<mosaic_0001>
module attributes {stable_mosaic.version = 11 : i64} {
  func.func @_conv1_kernel(%arg0: i32, %arg1: memref<1x16x16x4xf32, #tpu.memory_space<vmem>>, %arg2: memref<9x4x128xf32, #tpu.memory_space<vmem>>, %arg3: memref<1x16x16x128xf32, #tpu.memory_space<vmem>>, %arg4: memref<1x2x128xf32, #tpu.memory_space<vmem>>, %arg5: memref<18x18x4xf32, #tpu.memory_space<vmem>>) attributes {dimension_semantics = [#tpu.dimension_semantics<parallel>], iteration_bounds = array<i64: 2>, scalar_prefetch = 0 : i64, scratch_operands = 1 : i64, tpu.core_type = #tpu.core_type<tc>, window_params = [{transform_indices = @transform_0, window_bounds = array<i64: 1, 16, 16, 4>}, {pipeline_mode = #tpu.pipeline_mode<synchronous>, transform_indices = @transform_1, window_bounds = array<i64: 9, 4, 128>}, {transform_indices = @transform_2, window_bounds = array<i64: 1, 16, 16, 128>}, {transform_indices = @transform_3, window_bounds = array<i64: 1, 2, 128>}]} {
    %c0 = arith.constant 0 : index
    %c0_0 = arith.constant 0 : index
    %c0_1 = arith.constant 0 : index
    %c0_2 = arith.constant 0 : index
    %0 = vector.load %arg1[%c0, %c0_0, %c0_1, %c0_2] : memref<1x16x16x4xf32, #tpu.memory_space<vmem>>, vector<1x16x16x4xf32>
    %1 = vector.shape_cast %0 : vector<1x16x16x4xf32> to vector<16x16x4xf32>
    %cst = arith.constant 0.000000e+00 : f32
    %2 = vector.broadcast %cst : f32 to vector<1x18x4xf32>
    %c0_3 = arith.constant 0 : index
    %c0_4 = arith.constant 0 : index
    %c0_5 = arith.constant 0 : index
    %3 = vector.load %arg5[%c0_3, %c0_4, %c0_5] : memref<18x18x4xf32, #tpu.memory_space<vmem>>, vector<1x18x4xf32>
    tpu.vector_store %arg5[%c0_3, %c0_4, %c0_5], %2 {strides = array<i32>} : memref<18x18x4xf32, #tpu.memory_space<vmem>>, vector<1x18x4xf32>,
    %c17 = arith.constant 17 : index
    %c0_6 = arith.constant 0 : index
    %c0_7 = arith.constant 0 : index
    %4 = vector.load %arg5[%c17, %c0_6, %c0_7] : memref<18x18x4xf32, #tpu.memory_space<vmem>>, vector<1x18x4xf32>
    tpu.vector_store %arg5[%c17, %c0_6, %c0_7], %2 {strides = array<i32>} : memref<18x18x4xf32, #tpu.memory_space<vmem>>, vector<1x18x4xf32>,
    %cst_8 = arith.constant 0.000000e+00 : f32
    %5 = vector.broadcast %cst_8 : f32 to vector<16x1x4xf32>
    %c1 = arith.constant 1 : index
    %c0_9 = arith.constant 0 : index
    %c0_10 = arith.constant 0 : index
    %6 = vector.load %arg5[%c1, %c0_9, %c0_10] : memref<18x18x4xf32, #tpu.memory_space<vmem>>, vector<16x1x4xf32>
    tpu.vector_store %arg5[%c1, %c0_9, %c0_10], %5 {strides = array<i32>} : memref<18x18x4xf32, #tpu.memory_space<vmem>>, vector<16x1x4xf32>,
    %c1_11 = arith.constant 1 : index
    %c17_12 = arith.constant 17 : index
    %c0_13 = arith.constant 0 : index
    %7 = vector.load %arg5[%c1_11, %c17_12, %c0_13] : memref<18x18x4xf32, #tpu.memory_space<vmem>>, vector<16x1x4xf32>
    tpu.vector_store %arg5[%c1_11, %c17_12, %c0_13], %5 {strides = array<i32>} : memref<18x18x4xf32, #tpu.memory_space<vmem>>, vector<16x1x4xf32>,
    %c1_14 = arith.constant 1 : index
    %c1_15 = arith.constant 1 : index
    %c0_16 = arith.constant 0 : index
    %8 = vector.load %arg5[%c1_14, %c1_15, %c0_16] : memref<18x18x4xf32, #tpu.memory_space<vmem>>, vector<16x16x4xf32>
    tpu.vector_store %arg5[%c1_14, %c1_15, %c0_16], %1 {strides = array<i32>} : memref<18x18x4xf32, #tpu.memory_space<vmem>>, vector<16x16x4xf32>,
    %c0_17 = arith.constant 0 : index
    %c0_18 = arith.constant 0 : index
    %c0_19 = arith.constant 0 : index
    %9 = vector.load %arg5[%c0_17, %c0_18, %c0_19] : memref<18x18x4xf32, #tpu.memory_space<vmem>>, vector<18x18x4xf32>
    %cst_20 = arith.constant 0.000000e+00 : f32
    %10 = vector.broadcast %cst_20 : f32 to vector<256x128xf32>
    %11 = vector.extract_strided_slice %9 {offsets = [0, 0, 0], sizes = [18, 16, 4], strides = [1, 1, 1]} : vector<18x18x4xf32> to vector<18x16x4xf32>
    %12 = vector.shape_cast %11 : vector<18x16x4xf32> to vector<288x4xf32>
    %13 = vector.extract_strided_slice %12 {offsets = [0, 0], sizes = [256, 4], strides = [1, 1]} : vector<288x4xf32> to vector<256x4xf32>
    %c0_21 = arith.constant 0 : index
    %c0_22 = arith.constant 0 : index
    %c0_23 = arith.constant 0 : index
    %14 = vector.load %arg2[%c0_21, %c0_22, %c0_23] : memref<9x4x128xf32, #tpu.memory_space<vmem>>, vector<1x4x128xf32>
    %15 = vector.shape_cast %14 : vector<1x4x128xf32> to vector<4x128xf32>
    %cst_24 = arith.constant dense<0.000000e+00> : vector<256x128xf32>
    %16 = tpu.matmul %13, %15, %cst_24 {dimension_numbers = #tpu.dot_dimension_numbers<[1], [0], [0], [1], [0, 0, 1, 1], [], []>} : vector<256x4xf32>, vector<4x128xf32>, vector<256x128xf32> -> vector<256x128xf32>
    %17 = arith.addf %10, %16 : vector<256x128xf32>
    %18 = vector.extract_strided_slice %12 {offsets = [16, 0], sizes = [256, 4], strides = [1, 1]} : vector<288x4xf32> to vector<256x4xf32>
    %c3 = arith.constant 3 : index
    %c0_25 = arith.constant 0 : index
    %c0_26 = arith.constant 0 : index
    %19 = vector.load %arg2[%c3, %c0_25, %c0_26] : memref<9x4x128xf32, #tpu.memory_space<vmem>>, vector<1x4x128xf32>
    %20 = vector.shape_cast %19 : vector<1x4x128xf32> to vector<4x128xf32>
    %cst_27 = arith.constant dense<0.000000e+00> : vector<256x128xf32>
    %21 = tpu.matmul %18, %20, %cst_27 {dimension_numbers = #tpu.dot_dimension_numbers<[1], [0], [0], [1], [0, 0, 1, 1], [], []>} : vector<256x4xf32>, vector<4x128xf32>, vector<256x128xf32> -> vector<256x128xf32>
    %22 = arith.addf %17, %21 : vector<256x128xf32>
    %23 = vector.extract_strided_slice %12 {offsets = [32, 0], sizes = [256, 4], strides = [1, 1]} : vector<288x4xf32> to vector<256x4xf32>
    %c6 = arith.constant 6 : index
    %c0_28 = arith.constant 0 : index
    %c0_29 = arith.constant 0 : index
    %24 = vector.load %arg2[%c6, %c0_28, %c0_29] : memref<9x4x128xf32, #tpu.memory_space<vmem>>, vector<1x4x128xf32>
    %25 = vector.shape_cast %24 : vector<1x4x128xf32> to vector<4x128xf32>
    %cst_30 = arith.constant dense<0.000000e+00> : vector<256x128xf32>
    %26 = tpu.matmul %23, %25, %cst_30 {dimension_numbers = #tpu.dot_dimension_numbers<[1], [0], [0], [1], [0, 0, 1, 1], [], []>} : vector<256x4xf32>, vector<4x128xf32>, vector<256x128xf32> -> vector<256x128xf32>
    %27 = arith.addf %22, %26 : vector<256x128xf32>
    %28 = vector.extract_strided_slice %9 {offsets = [0, 1, 0], sizes = [18, 16, 4], strides = [1, 1, 1]} : vector<18x18x4xf32> to vector<18x16x4xf32>
    %29 = vector.shape_cast %28 : vector<18x16x4xf32> to vector<288x4xf32>
    %30 = vector.extract_strided_slice %29 {offsets = [0, 0], sizes = [256, 4], strides = [1, 1]} : vector<288x4xf32> to vector<256x4xf32>
    %c1_31 = arith.constant 1 : index
    %c0_32 = arith.constant 0 : index
    %c0_33 = arith.constant 0 : index
    %31 = vector.load %arg2[%c1_31, %c0_32, %c0_33] : memref<9x4x128xf32, #tpu.memory_space<vmem>>, vector<1x4x128xf32>
    %32 = vector.shape_cast %31 : vector<1x4x128xf32> to vector<4x128xf32>
    %cst_34 = arith.constant dense<0.000000e+00> : vector<256x128xf32>
    %33 = tpu.matmul %30, %32, %cst_34 {dimension_numbers = #tpu.dot_dimension_numbers<[1], [0], [0], [1], [0, 0, 1, 1], [], []>} : vector<256x4xf32>, vector<4x128xf32>, vector<256x128xf32> -> vector<256x128xf32>
    %34 = arith.addf %27, %33 : vector<256x128xf32>
    %35 = vector.extract_strided_slice %29 {offsets = [16, 0], sizes = [256, 4], strides = [1, 1]} : vector<288x4xf32> to vector<256x4xf32>
    %c4 = arith.constant 4 : index
    %c0_35 = arith.constant 0 : index
    %c0_36 = arith.constant 0 : index
    %36 = vector.load %arg2[%c4, %c0_35, %c0_36] : memref<9x4x128xf32, #tpu.memory_space<vmem>>, vector<1x4x128xf32>
    %37 = vector.shape_cast %36 : vector<1x4x128xf32> to vector<4x128xf32>
    %cst_37 = arith.constant dense<0.000000e+00> : vector<256x128xf32>
    %38 = tpu.matmul %35, %37, %cst_37 {dimension_numbers = #tpu.dot_dimension_numbers<[1], [0], [0], [1], [0, 0, 1, 1], [], []>} : vector<256x4xf32>, vector<4x128xf32>, vector<256x128xf32> -> vector<256x128xf32>
    %39 = arith.addf %34, %38 : vector<256x128xf32>
    %40 = vector.extract_strided_slice %29 {offsets = [32, 0], sizes = [256, 4], strides = [1, 1]} : vector<288x4xf32> to vector<256x4xf32>
    %c7 = arith.constant 7 : index
    %c0_38 = arith.constant 0 : index
    %c0_39 = arith.constant 0 : index
    %41 = vector.load %arg2[%c7, %c0_38, %c0_39] : memref<9x4x128xf32, #tpu.memory_space<vmem>>, vector<1x4x128xf32>
    %42 = vector.shape_cast %41 : vector<1x4x128xf32> to vector<4x128xf32>
    %cst_40 = arith.constant dense<0.000000e+00> : vector<256x128xf32>
    %43 = tpu.matmul %40, %42, %cst_40 {dimension_numbers = #tpu.dot_dimension_numbers<[1], [0], [0], [1], [0, 0, 1, 1], [], []>} : vector<256x4xf32>, vector<4x128xf32>, vector<256x128xf32> -> vector<256x128xf32>
    %44 = arith.addf %39, %43 : vector<256x128xf32>
    %45 = vector.extract_strided_slice %9 {offsets = [0, 2, 0], sizes = [18, 16, 4], strides = [1, 1, 1]} : vector<18x18x4xf32> to vector<18x16x4xf32>
    %46 = vector.shape_cast %45 : vector<18x16x4xf32> to vector<288x4xf32>
    %47 = vector.extract_strided_slice %46 {offsets = [0, 0], sizes = [256, 4], strides = [1, 1]} : vector<288x4xf32> to vector<256x4xf32>
    %c2 = arith.constant 2 : index
    %c0_41 = arith.constant 0 : index
    %c0_42 = arith.constant 0 : index
    %48 = vector.load %arg2[%c2, %c0_41, %c0_42] : memref<9x4x128xf32, #tpu.memory_space<vmem>>, vector<1x4x128xf32>
    %49 = vector.shape_cast %48 : vector<1x4x128xf32> to vector<4x128xf32>
    %cst_43 = arith.constant dense<0.000000e+00> : vector<256x128xf32>
    %50 = tpu.matmul %47, %49, %cst_43 {dimension_numbers = #tpu.dot_dimension_numbers<[1], [0], [0], [1], [0, 0, 1, 1], [], []>} : vector<256x4xf32>, vector<4x128xf32>, vector<256x128xf32> -> vector<256x128xf32>
    %51 = arith.addf %44, %50 : vector<256x128xf32>
    %52 = vector.extract_strided_slice %46 {offsets = [16, 0], sizes = [256, 4], strides = [1, 1]} : vector<288x4xf32> to vector<256x4xf32>
    %c5 = arith.constant 5 : index
    %c0_44 = arith.constant 0 : index
    %c0_45 = arith.constant 0 : index
    %53 = vector.load %arg2[%c5, %c0_44, %c0_45] : memref<9x4x128xf32, #tpu.memory_space<vmem>>, vector<1x4x128xf32>
    %54 = vector.shape_cast %53 : vector<1x4x128xf32> to vector<4x128xf32>
    %cst_46 = arith.constant dense<0.000000e+00> : vector<256x128xf32>
    %55 = tpu.matmul %52, %54, %cst_46 {dimension_numbers = #tpu.dot_dimension_numbers<[1], [0], [0], [1], [0, 0, 1, 1], [], []>} : vector<256x4xf32>, vector<4x128xf32>, vector<256x128xf32> -> vector<256x128xf32>
    %56 = arith.addf %51, %55 : vector<256x128xf32>
    %57 = vector.extract_strided_slice %46 {offsets = [32, 0], sizes = [256, 4], strides = [1, 1]} : vector<288x4xf32> to vector<256x4xf32>
    %c8 = arith.constant 8 : index
    %c0_47 = arith.constant 0 : index
    %c0_48 = arith.constant 0 : index
    %58 = vector.load %arg2[%c8, %c0_47, %c0_48] : memref<9x4x128xf32, #tpu.memory_space<vmem>>, vector<1x4x128xf32>
    %59 = vector.shape_cast %58 : vector<1x4x128xf32> to vector<4x128xf32>
    %cst_49 = arith.constant dense<0.000000e+00> : vector<256x128xf32>
    %60 = tpu.matmul %57, %59, %cst_49 {dimension_numbers = #tpu.dot_dimension_numbers<[1], [0], [0], [1], [0, 0, 1, 1], [], []>} : vector<256x4xf32>, vector<4x128xf32>, vector<256x128xf32> -> vector<256x128xf32>
    %61 = arith.addf %56, %60 : vector<256x128xf32>
    %62 = vector.shape_cast %61 : vector<256x128xf32> to vector<1x16x16x128xf32>
    %c0_50 = arith.constant 0 : index
    %c0_51 = arith.constant 0 : index
    %c0_52 = arith.constant 0 : index
    %c0_53 = arith.constant 0 : index
    %63 = vector.load %arg3[%c0_50, %c0_51, %c0_52, %c0_53] : memref<1x16x16x128xf32, #tpu.memory_space<vmem>>, vector<1x16x16x128xf32>
    tpu.vector_store %arg3[%c0_50, %c0_51, %c0_52, %c0_53], %62 {strides = array<i32>} : memref<1x16x16x128xf32, #tpu.memory_space<vmem>>, vector<1x16x16x128xf32>,
    %cst_54 = arith.constant dense<0.000000e+00> : vector<128xf32>
    %64 = vector.multi_reduction <add>, %61, %cst_54 [0] : vector<256x128xf32> to vector<128xf32>
    %65 = vector.shape_cast %64 : vector<128xf32> to vector<1x128xf32>
    %66 = arith.mulf %61, %61 : vector<256x128xf32>
    %cst_55 = arith.constant dense<0.000000e+00> : vector<128xf32>
    %67 = vector.multi_reduction <add>, %66, %cst_55 [0] : vector<256x128xf32> to vector<128xf32>
    %68 = vector.shape_cast %67 : vector<128xf32> to vector<1x128xf32>
    %69 = tpu.concatenate %65, %68 in 0 : vector<1x128xf32>, vector<1x128xf32> -> vector<2x128xf32>
    %c0_56 = arith.constant 0 : index
    %c0_57 = arith.constant 0 : index
    %c0_58 = arith.constant 0 : index
    %70 = vector.load %arg4[%c0_56, %c0_57, %c0_58] : memref<1x2x128xf32, #tpu.memory_space<vmem>>, vector<1x2x128xf32>
    %71 = vector.shape_cast %70 : vector<1x2x128xf32> to vector<2x128xf32>
    %72 = vector.shape_cast %69 : vector<2x128xf32> to vector<1x2x128xf32>
    tpu.vector_store %arg4[%c0_56, %c0_57, %c0_58], %72 {strides = array<i32>} : memref<1x2x128xf32, #tpu.memory_space<vmem>>, vector<1x2x128xf32>,
    return
  }
  func.func @transform_0(%arg0: i32) -> (i32, i32, i32, i32) {
    %c0_i32 = arith.constant 0 : i32
    %c0_i32_0 = arith.constant 0 : i32
    %c0_i32_1 = arith.constant 0 : i32
    %c0_i32_2 = arith.constant 0 : i32
    return %arg0, %c0_i32, %c0_i32_0, %c0_i32_1 : i32, i32, i32, i32
  }
  func.func @transform_1(%arg0: i32) -> (i32, i32, i32) {
    %c0_i32 = arith.constant 0 : i32
    %c0_i32_0 = arith.constant 0 : i32
    %c0_i32_1 = arith.constant 0 : i32
    %c0_i32_2 = arith.constant 0 : i32
    return %c0_i32, %c0_i32_0, %c0_i32_1 : i32, i32, i32
  }
  func.func @transform_2(%arg0: i32) -> (i32, i32, i32, i32) {
    %c0_i32 = arith.constant 0 : i32
    %c0_i32_0 = arith.constant 0 : i32
    %c0_i32_1 = arith.constant 0 : i32
    %c0_i32_2 = arith.constant 0 : i32
    return %arg0, %c0_i32, %c0_i32_0, %c0_i32_1 : i32, i32, i32, i32
  }
  func.func @transform_3(%arg0: i32) -> (i32, i32, i32) {
    %c0_i32 = arith.constant 0 : i32
    %c0_i32_0 = arith.constant 0 : i32
    %c0_i32_1 = arith.constant 0 : i32
    return %arg0, %c0_i32, %c0_i32_0 : i32, i32, i32
  }
}

</mosaic_0001>

<bundles_post_ra>
// kernel: tpu_custom_call.1
= control target key start
LH: loop header
LB: loop body
LE: loop exit
PB: predicated region body
PF: predicated region fallthrough
CT: control target
= control target key end

     0   :  { %9 = vsyncpa [#allocation4], 0  ;;  %s6218_s0 = inlined_call_operand.vmem [shape: f32[2,16,16,4], index: 0, kind: input, shape index: {}]   ;;  %s6219_s1 = inlined_call_operand.vmem [shape: f32[9,4,128], index: 1, kind: input, shape index: {}]   ;;  %s6220_s2 = inlined_call_operand.hbm [shape: f32[2,16,16,128], index: 2, kind: output, shape index: {0}]   ;;  %s6221_s3 = inlined_call_operand.hbm [shape: f32[2,2,128], index: 3, kind: output, shape index: {1}]  }
   0x1   :  { %11 = vsyncpa [#allocation4 + $0x1], 0 }
   0x2   :  { %12 = vsyncpa [#allocation6], 0 }
   0x3   :  { %14 = vsyncpa [#allocation6 + $0x1], 0  ;;  %s4850_s12 = smov 0   ;;  %s4852_s13 = smov 0  }
   0x4   :  { %s4854_s14 = smov 0   ;;  %s4856_s15 = smov 0  }
   0x5 LB: > { %s4871_s16 = sadd.s32 4294967295, %s4823_s15   ;;  %s3354_s17 = sadd.s32 4294967294, %s4823_s15   ;;  %s4823_s15 = sphi %s4856_s15, %s6352_s15   ;;  %s4819_s14 = sphi %s4854_s14, %s6351_s14   ;;  %s4815_s13 = sphi %s4852_s13, %s6350_s13   ;;  %s4811_s12 = sphi %s4850_s12, %s6349_s12  }
   0x6   : > { %s4875_s18 = sadd.s32 1, %s4823_s15   ;;  %s74_s19 = sadd.s32 1, %s4819_s14 }
   0x7   : > { %s71_s20 = ssub.s32 %s4823_s15, %s4875_s18  ;;  %p84_p0 = scmp.ne.s32.totalorder %s4819_s14, %s4815_s13 }
   0x8   : > { %p72_p1 = scmp.eq.s32.totalorder %s71_s20, 0  ;;  %p85_p2 = scmp.eq.s32.totalorder %s4871_s16, 1 }
   0x9   : > { %p90_p3 = scmp.ne.s32.totalorder %s4815_s13, %s4811_s12  ;;  %p91_p4 = scmp.eq.s32.totalorder %s3354_s17, 1 }
   0xa   : > { %s4886_s21 = scalar_select %p72_p1, %s4819_s14, %s74_s19  }
   0xb   : > { %p4888_p5 = por %p85_p2, %p84_p0  ;;  %p4892_p6 = por %p91_p4, %p90_p3 }
   0xc   : > { %p3357_p7 = scmp.ge.s32.totalorder %s4823_s15, 1  ;;  %p146_p8 = scmp.lt.s32.totalorder %s4823_s15, 3 }
   0xe   : > { %p147_p9 = pnand %p3357_p7, %p146_p8 }
  0x10   : > { %150 = sbr.rel (%p147_p9) target bundleno = 600 (0x258), region = 28 }
  0x17   : > { %v3362_v0 = vld [vmem:[%s6219_s1 + $0xc] sm:$0xf]  ;;  %vm440_vm0 = vcmask 1043456   ;;  %p175_p10 = scmp.lt.s32.totalorder %s4871_s16, 1  ;;  %vm212_vm1 = vcmask 31744   ;;  %vm222_vm2 = vcmask 24576  }
  0x18   : > { %3973 = vmatprep.subr.msk.mxu1 %vm440_vm0, %v3362_v0  ;;  %v4825_v1 = vmov 0.0   ;;  %v4910_v2 = vld [vmem:[%s6219_s1 + $0x10] sm:$0xf]  ;;  %v4915_v3 = vld [vmem:[%s6219_s1] sm:$0xf]  ;;  %vm215_vm3 = vcmask 25600  }
  0x19   : > { %213 = vst.msk [vmem:[#allocation2] sm:$0xff] %vm212_vm1, %v4825_v1  ;;  %214 = vst.msk [vmem:[#allocation2 + $0x8] sm:$0xff] %vm212_vm1, %v4825_v1  ;;  %3974 = vmatpush3.msk.msra.mxu1 %vm440_vm0, %v3362_v0  ;;  %s4919_s30 = scalar_select %p175_p10, %s4871_s16, 1  ;;  %4173 = vmatprep.subr.msk.mxu0 %vm440_vm0, %v4910_v2  ;;  %v4958_v4 = vld [vmem:[%s6219_s1 + $0x1c] sm:$0xf]  ;;  %vm1189_vm4 = vcmask 1046528  }
  0x1a   : > { %218 = vst.msk [vmem:[#allocation2 + $0x198] sm:$0xff] %vm212_vm1, %v4825_v1  ;;  %219 = vst.msk [vmem:[#allocation2 + $0x1a0] sm:$0xff] %vm212_vm1, %v4825_v1  ;;  %4174 = vmatpush3.msk.msra.mxu0 %vm440_vm0, %v4910_v2  ;;  %4023 = vmatprep.subr.msk.mxu1 %vm440_vm0, %v4915_v3  ;;  %v5035_v35 = vld [vmem:[%s6219_s1 + $0x18] sm:$0xf]  ;;  %v5081_v52 = vld [vmem:[%s6219_s1 + $0x8] sm:$0xf] }
  0x1b   : > { %223 = vst.msk [vmem:[#allocation2 + $0x18] sm:$0x1] %vm222_vm2, %v4825_v1  ;;  %224 = vst.msk [vmem:[#allocation2 + $0x30] sm:$0x1] %vm222_vm2, %v4825_v1  ;;  %s3674_s6 = sshll.u32 %s4919_s30, 8  ;;  %4223 = vmatprep.subr.msk.mxu0 %vm440_vm0, %v4958_v4  ;;  %vm2138_vm5 = vcmask 1045504  }
  0x1c   : > { %225 = vst.msk [vmem:[#allocation2 + $0x48] sm:$0x1] %vm222_vm2, %v4825_v1  ;;  %226 = vst.msk [vmem:[#allocation2 + $0x60] sm:$0x1] %vm222_vm2, %v4825_v1  ;;  %s4970_s9 = scalar_lea.vmem %s6218_s0, %s3674_s6  ;;  %s6094_s4 = sand.u32 1, %s4815_s13  }
  0x1d   : > { %227 = vst.msk [vmem:[#allocation2 + $0x78] sm:$0x1] %vm222_vm2, %v4825_v1  ;;  %228 = vst.msk [vmem:[#allocation2 + $0x90] sm:$0x1] %vm222_vm2, %v4825_v1  ;;  %v180_v5 = vld [vmem:[%s4970_s9] sm:$0xff]  ;;  %v181_v6 = vld [vmem:[%s4970_s9 + $0x8] sm:$0xff] }
  0x1e   : > { %229 = vst.msk [vmem:[#allocation2 + $0xa8] sm:$0x1] %vm222_vm2, %v4825_v1  ;;  %230 = vst.msk [vmem:[#allocation2 + $0xc0] sm:$0x1] %vm222_vm2, %v4825_v1  ;;  %v182_v7 = vld [vmem:[%s4970_s9 + $0x10] sm:$0xff]  ;;  %v183_v8 = vld [vmem:[%s4970_s9 + $0x18] sm:$0xff] }
  0x1f   : > { %231 = vst.msk [vmem:[#allocation2 + $0xd8] sm:$0x1] %vm222_vm2, %v4825_v1  ;;  %232 = vst.msk [vmem:[#allocation2 + $0xf0] sm:$0x1] %vm222_vm2, %v4825_v1  ;;  %v184_v9 = vld [vmem:[%s4970_s9 + $0x20] sm:$0xff]  ;;  %v185_v10 = vld [vmem:[%s4970_s9 + $0x28] sm:$0xff] }
  0x20   : > { %233 = vst.msk [vmem:[#allocation2 + $0x108] sm:$0x1] %vm222_vm2, %v4825_v1  ;;  %234 = vst.msk [vmem:[#allocation2 + $0x120] sm:$0x1] %vm222_vm2, %v4825_v1  ;;  %v186_v11 = vld [vmem:[%s4970_s9 + $0x30] sm:$0xff]  ;;  %v187_v12 = vld [vmem:[%s4970_s9 + $0x38] sm:$0xff] }
  0x21   : > { %235 = vst.msk [vmem:[#allocation2 + $0x138] sm:$0x1] %vm222_vm2, %v4825_v1  ;;  %236 = vst.msk [vmem:[#allocation2 + $0x150] sm:$0x1] %vm222_vm2, %v4825_v1  ;;  %v188_v13 = vld [vmem:[%s4970_s9 + $0x40] sm:$0xff]  ;;  %v189_v14 = vld [vmem:[%s4970_s9 + $0x48] sm:$0xff] }
  0x22   : > { %237 = vst.msk [vmem:[#allocation2 + $0x168] sm:$0x1] %vm222_vm2, %v4825_v1  ;;  %238 = vst.msk [vmem:[#allocation2 + $0x180] sm:$0x1] %vm222_vm2, %v4825_v1  ;;  %v190_v15 = vld [vmem:[%s4970_s9 + $0x50] sm:$0xff]  ;;  %v191_v16 = vld [vmem:[%s4970_s9 + $0x58] sm:$0xff] }
  0x23   : > { %239 = vst.msk [vmem:[#allocation2 + $0x29] sm:$0x1] %vm222_vm2, %v4825_v1  ;;  %240 = vst.msk [vmem:[#allocation2 + $0x41] sm:$0x1] %vm222_vm2, %v4825_v1  ;;  %v192_v17 = vld [vmem:[%s4970_s9 + $0x60] sm:$0xff]  ;;  %v193_v18 = vld [vmem:[%s4970_s9 + $0x68] sm:$0xff] }
  0x24   : > { %241 = vst.msk [vmem:[#allocation2 + $0x59] sm:$0x1] %vm222_vm2, %v4825_v1  ;;  %242 = vst.msk [vmem:[#allocation2 + $0x71] sm:$0x1] %vm222_vm2, %v4825_v1  ;;  %v194_v19 = vld [vmem:[%s4970_s9 + $0x70] sm:$0xff]  ;;  %v195_v20 = vld [vmem:[%s4970_s9 + $0x78] sm:$0xff] }
  0x25   : > { %243 = vst.msk [vmem:[#allocation2 + $0x89] sm:$0x1] %vm222_vm2, %v4825_v1  ;;  %244 = vst.msk [vmem:[#allocation2 + $0xa1] sm:$0x1] %vm222_vm2, %v4825_v1  ;;  %v196_v21 = vld [vmem:[%s4970_s9 + $0x80] sm:$0xff]  ;;  %v197_v22 = vld [vmem:[%s4970_s9 + $0x88] sm:$0xff] }
  0x26   : > { %245 = vst.msk [vmem:[#allocation2 + $0xb9] sm:$0x1] %vm222_vm2, %v4825_v1  ;;  %246 = vst.msk [vmem:[#allocation2 + $0xd1] sm:$0x1] %vm222_vm2, %v4825_v1  ;;  %v198_v23 = vld [vmem:[%s4970_s9 + $0x90] sm:$0xff]  ;;  %v199_v24 = vld [vmem:[%s4970_s9 + $0x98] sm:$0xff] }
  0x27   : > { %247 = vst.msk [vmem:[#allocation2 + $0xe9] sm:$0x1] %vm222_vm2, %v4825_v1  ;;  %248 = vst.msk [vmem:[#allocation2 + $0x101] sm:$0x1] %vm222_vm2, %v4825_v1  ;;  %v200_v25 = vld [vmem:[%s4970_s9 + $0xa0] sm:$0xff]  ;;  %v201_v26 = vld [vmem:[%s4970_s9 + $0xa8] sm:$0xff] }
  0x28   : > { %249 = vst.msk [vmem:[#allocation2 + $0x119] sm:$0x1] %vm222_vm2, %v4825_v1  ;;  %250 = vst.msk [vmem:[#allocation2 + $0x131] sm:$0x1] %vm222_vm2, %v4825_v1  ;;  %v202_v27 = vld [vmem:[%s4970_s9 + $0xb0] sm:$0xff]  ;;  %v203_v28 = vld [vmem:[%s4970_s9 + $0xb8] sm:$0xff] }
  0x29   : > { %251 = vst.msk [vmem:[#allocation2 + $0x149] sm:$0x1] %vm222_vm2, %v4825_v1  ;;  %252 = vst.msk [vmem:[#allocation2 + $0x161] sm:$0x1] %vm222_vm2, %v4825_v1  ;;  %s3358_s5 = sshll.u32 %s6094_s4, 8  ;;  %s3675_s7 = sshll.u32 %s4871_s16, 12 }
  0x2a   : > { %253 = vst.msk [vmem:[#allocation2 + $0x179] sm:$0x1] %vm222_vm2, %v4825_v1  ;;  %254 = vst.msk [vmem:[#allocation2 + $0x191] sm:$0x1] %vm222_vm2, %v4825_v1  ;;  %s6097_s6 = scalar_lea.vmem [#allocation3], %s3358_s5  ;;  %s6140_s11 = scalar_lea.hbm %s6220_s2, %s3675_s7 }
  0x2b   : > { %216 = vst.msk [vmem:[#allocation2 + $0x10] sm:$0x3] %vm215_vm3, %v4825_v1  ;;  %220 = vst.msk [vmem:[#allocation2 + $0x1a8] sm:$0x3] %vm215_vm3, %v4825_v1  ;;  %s3247_s8 = sshll.u32 %s6097_s6, 4  ;;  %s3229_s17 = scalar_lea.sflag [#allocation4], %s6094_s4  ;;  %s6142_s8 = int_to_ptr.vmem [resolvable:$true] %s3247_s8 }
  0x2c   : > { %255 = vst.msk [vmem:[#allocation2 + $0x19] sm:$0xff] %vm212_vm1, %v180_v5  ;;  %256 = vst.msk [vmem:[#allocation2 + $0x21] sm:$0xff] %vm212_vm1, %v181_v6  ;;  %v204_v6 = vld [vmem:[%s4970_s9 + $0xc0] sm:$0xff]  ;;  %s4729_s19 = scalar_lea.vmem %s6142_s8, 4096  ;;  %s4826_s20 = smov [#allocation3]  }
  0x2d   : > { %257 = vst.msk [vmem:[#allocation2 + $0x31] sm:$0xff] %vm212_vm1, %v182_v7  ;;  %258 = vst.msk [vmem:[#allocation2 + $0x39] sm:$0xff] %vm212_vm1, %v183_v8  ;;  %v205_v7 = vld [vmem:[%s4970_s9 + $0xc8] sm:$0xff]  ;;  %v206_v8 = vld [vmem:[%s4970_s9 + $0xd0] sm:$0xff]  ;;  %p4730_p11 = scmp.ne.s32.totalorder %s6142_s8, %s4729_s19  ;;  %s4733_s24 = sshll.u32 %s4826_s20, 4  ;;  %s4734_s24 = int_to_ptr.vmem [resolvable:$false] %s4733_s24 }
  0x2e   : > { %259 = vst.msk [vmem:[#allocation2 + $0x49] sm:$0xff] %vm212_vm1, %v184_v9  ;;  %260 = vst.msk [vmem:[#allocation2 + $0x51] sm:$0xff] %vm212_vm1, %v185_v10  ;;  %v207_v9 = vld [vmem:[%s4970_s9 + $0xd8] sm:$0xff]  ;;  %v208_v10 = vld [vmem:[%s4970_s9 + $0xe0] sm:$0xff]  ;;  %s4735_s25 = scalar_lea.vmem %s4734_s24, 8192  ;;  %p4736_p0 = scmp.lt.s32.totalorder %s6142_s8, %s4734_s24 }
  0x2f   : > { %261 = vst.msk [vmem:[#allocation2 + $0x61] sm:$0xff] %vm212_vm1, %v186_v11  ;;  %262 = vst.msk [vmem:[#allocation2 + $0x69] sm:$0xff] %vm212_vm1, %v187_v12  ;;  %v209_v11 = vld [vmem:[%s4970_s9 + $0xe8] sm:$0xff]  ;;  %p4731_p12 = pnand %p4730_p11, %p4888_p5  ;;  %p4737_p1 = scmp.lt.s32.totalorder %s4735_s25, %s4729_s19 }
  0x30   : > { %263 = vst.msk [vmem:[#allocation2 + $0x79] sm:$0xff] %vm212_vm1, %v188_v13  ;;  %264 = vst.msk [vmem:[#allocation2 + $0x81] sm:$0xff] %vm212_vm1, %v189_v14  ;;  %v210_v14 = vld [vmem:[%s4970_s9 + $0xf0] sm:$0xff] }
  0x31   : > { %265 = vst.msk [vmem:[#allocation2 + $0x91] sm:$0xff] %vm212_vm1, %v190_v15  ;;  %266 = vst.msk [vmem:[#allocation2 + $0x99] sm:$0xff] %vm212_vm1, %v191_v16  ;;  %v211_v15 = vld [vmem:[%s4970_s9 + $0xf8] sm:$0xff]  ;;  %p4732_p13 = pneg %p4731_p12  ;;  %p4738_p2 = por %p4737_p1, %p4736_p0 }
  0x32   : > { %267 = vst.msk [vmem:[#allocation2 + $0xa9] sm:$0xff] %vm212_vm1, %v192_v17  ;;  %268 = vst.msk [vmem:[#allocation2 + $0xb1] sm:$0xff] %vm212_vm1, %v193_v18 }
  0x33   : > { %269 = vst.msk [vmem:[#allocation2 + $0xc1] sm:$0xff] %vm212_vm1, %v194_v19  ;;  %270 = vst.msk [vmem:[#allocation2 + $0xc9] sm:$0xff] %vm212_vm1, %v195_v20  ;;  %v5017_v29 = vld [vmem:[#allocation2 + $0x18] sm:$0xff]  ;;  %v5019_v30 = vld [vmem:[#allocation2 + $0x20] sm:$0xff]  ;;  %p4739_p3 = pnand %p4738_p2, %p4732_p13 }
  0x34   : > { %271 = vst.msk [vmem:[#allocation2 + $0xd9] sm:$0xff] %vm212_vm1, %v196_v21  ;;  %272 = vst.msk [vmem:[#allocation2 + $0xe1] sm:$0xff] %vm212_vm1, %v197_v22  ;;  %v5021_v31 = vld [vmem:[#allocation2 + $0x30] sm:$0xff]  ;;  %3975 = vmatprep.mubr.msk.f32.mxu1 %vm212_vm1, %v5017_v29  ;;  %v1195_v32 = vrot.slane %v5017_v29, 1  ;;  %v1196_v33 = vrot.slane %v5019_v30, 1  ;;  %v5040_v37 = vld [vmem:[#allocation2 + $0x38] sm:$0xff] }
  0x35   : > { %273 = vst.msk [vmem:[#allocation2 + $0xf1] sm:$0xff] %vm212_vm1, %v198_v23  ;;  %274 = vst.msk [vmem:[#allocation2 + $0xf9] sm:$0xff] %vm212_vm1, %v199_v24  ;;  %v5030_v34 = vld [vmem:[#allocation2 + $0x28] sm:$0x3]  ;;  %3976 = vmatmul.mubr.msk.f32.vlgmr.msra.gmra.mrb[0].mxu1 %vm212_vm1, %v5019_v30  ;;  %v1200_v38 = vrot.slane %v5021_v31, 1  ;;  %v1201_v42 = vrot.slane %v5040_v37, 1 }
  0x36   : > { %275 = vst.msk [vmem:[#allocation2 + $0x109] sm:$0xff] %vm212_vm1, %v200_v25  ;;  %276 = vst.msk [vmem:[#allocation2 + $0x111] sm:$0xff] %vm212_vm1, %v201_v26  ;;  %v1198_v36 = vrot.slane %v5030_v34, 1  ;;  %v5043_v39 = vld [vmem:[#allocation2 + $0x48] sm:$0xff]  ;;  %v5045_v40 = vld [vmem:[#allocation2 + $0x40] sm:$0x3]  ;;  %v5048_v41 = vsel %vm1189_vm4, %v1195_v32, %v1196_v33  ;;  %3978 = vmatprep.mubr.msk.f32.mxu1 %vm212_vm1, %v5021_v31  ;;  %4024 = vmatpush3.msk.msra.mxu1 %vm440_vm0, %v4915_v3 }
  0x37   : > { %277 = vst.msk [vmem:[#allocation2 + $0x121] sm:$0xff] %vm212_vm1, %v202_v27  ;;  %278 = vst.msk [vmem:[#allocation2 + $0x129] sm:$0xff] %vm212_vm1, %v203_v28  ;;  %v1203_v43 = vrot.slane %v5045_v40, 1  ;;  %v5056_v44 = vld [vmem:[#allocation2 + $0x50] sm:$0xff]  ;;  %v1205_v45 = vrot.slane %v5043_v39, 1  ;;  %4175 = vmatprep.mubr.msk.f32.mxu0 %vm212_vm1, %v5048_v41  ;;  %v5065_v48 = vld [vmem:[#allocation2 + $0x60] sm:$0xff]  ;;  %4073 = vmatprep.subr.msk.mxu1 %vm440_vm0, %v5035_v35  ;;  %v5076_v51 = vsel %vm1189_vm4, %v1200_v38, %v1201_v42 }
  0x38   : > { %6275 = vst [vmem:[#allocation9_spill] sm:$0xff] %v5048_v41  ;;  %v5062_v46 = vsel %vm1189_vm4, %v1196_v33, %v1198_v36  ;;  %v1206_v47 = vrot.slane %v5056_v44, 1  ;;  %v5067_v49 = vld [vmem:[#allocation2 + $0x58] sm:$0x3]  ;;  %v5069_v50 = vld [vmem:[#allocation2 + $0x68] sm:$0xff]  ;;  %6277 = vst [vmem:[#allocation11_spill] sm:$0xff] %v5076_v51 }
  0x39   : > { %6276 = vst [vmem:[#allocation10_spill] sm:$0xff] %v5062_v46  ;;  %4176 = vmatmul.mubr.msk.f32.vlgmr.msra.gmra.mrb[0].mxu0 %vm212_vm1, %v5062_v46  ;;  %3979 = vmatmul.mubr.msk.f32.gmra.mrb[2].mxu1 %vm212_vm1, %v5040_v37  ;;  %v5088_v53 = vsel %vm1189_vm4, %v1201_v42, %v1203_v43  ;;  %v1208_v54 = vrot.slane %v5067_v49, 1  ;;  %v1210_v56 = vrot.slane %v5065_v48, 1  ;;  %v1211_v57 = vrot.slane %v5069_v50, 1  ;;  %v5100_v58 = vld [vmem:[#allocation2 + $0x70] sm:$0x3] }
  0x3a   : > { %4224 = vmatpush3.msk.msra.mxu0 %vm440_vm0, %v4958_v4  ;;  %6278 = vst [vmem:[#allocation12_spill] sm:$0xff] %v5088_v53  ;;  %4178 = vmatprep.mubr.msk.f32.mxu0 %vm212_vm1, %v5076_v51  ;;  %v5096_v55 = vsel %vm1189_vm4, %v1205_v45, %v1206_v47  ;;  %v5102_v59 = vld [vmem:[#allocation2 + $0x78] sm:$0xff]  ;;  %v5104_v60 = vld [vmem:[#allocation2 + $0x80] sm:$0xff]  ;;  %v1213_v62 = vrot.slane %v5100_v58, 1  ;;  %v5125_v3 = vld [vmem:[#allocation2 + $0x90] sm:$0xff] }
  0x3b   : > { %3981 = vmatprep.mubr.msk.f32.mxu1 %vm212_vm1, %v5043_v39  ;;  %6279 = vst [vmem:[#allocation13_spill] sm:$0xff] %v5096_v55  ;;  %4273 = vmatprep.subr.msk.mxu0 %vm440_vm0, %v5081_v52  ;;  %v5115_v61 = vsel %vm1189_vm4, %v1206_v47, %v1208_v54  ;;  %v5121_v63 = vsel %vm1189_vm4, %v1210_v56, %v1211_v57  ;;  %v1215_v0 = vrot.slane %v5102_v59, 1  ;;  %v1216_v1 = vrot.slane %v5104_v60, 1  ;;  %v5127_v4 = vld [vmem:[#allocation2 + $0x88] sm:$0x3]  ;;  %v5129_v5 = vld [vmem:[#allocation2 + $0x98] sm:$0xff] }
  0x3c   : > { %6280 = vst [vmem:[#allocation14_spill] sm:$0xff] %v5115_v61  ;;  %6281 = vst [vmem:[#allocation15_spill] sm:$0xff] %v5121_v63  ;;  %v5147_v12 = vsel %vm1189_vm4, %v1211_v57, %v1213_v62  ;;  %v1218_v13 = vrot.slane %v5127_v4, 1  ;;  %v1220_v17 = vrot.slane %v5125_v3, 1  ;;  %v1221_v18 = vrot.slane %v5129_v5, 1  ;;  %v5166_v20 = vld [vmem:[#allocation2 + $0xa8] sm:$0xff] }
  0x3d   : > { %4179 = vmatmul.mubr.msk.f32.gmra.mrb[2].mxu0 %vm212_vm1, %v5088_v53  ;;  %3982 = vmatmul.mubr.msk.f32.gmra.mrb[4].mxu1 %vm212_vm1, %v5056_v44  ;;  %279 = vst.msk [vmem:[#allocation2 + $0x139] sm:$0xff] %vm212_vm1, %v204_v6  ;;  %280 = vst.msk [vmem:[#allocation2 + $0x141] sm:$0xff] %vm212_vm1, %v205_v7  ;;  %v5158_v16 = vsel %vm1189_vm4, %v1215_v0, %v1216_v1  ;;  %v5162_v19 = vld [vmem:[#allocation2 + $0xa0] sm:$0x3]  ;;  %v5168_v21 = vld [vmem:[#allocation2 + $0xb0] sm:$0xff]  ;;  %v1225_v25 = vrot.slane %v5166_v20, 1 }
  0x3e   : > { %4181 = vmatprep.mubr.msk.f32.mxu0 %vm212_vm1, %v5096_v55  ;;  %3984 = vmatprep.mubr.msk.f32.mxu1 %vm212_vm1, %v5065_v48  ;;  %281 = vst.msk [vmem:[#allocation2 + $0x151] sm:$0xff] %vm212_vm1, %v206_v8  ;;  %6282 = vst [vmem:[#allocation16_spill] sm:$0xff] %v5147_v12  ;;  %v5177_v22 = vsel %vm1189_vm4, %v1216_v1, %v1218_v13  ;;  %v1223_v23 = vrot.slane %v5162_v19, 1  ;;  %v5183_v24 = vsel %vm1189_vm4, %v1220_v17, %v1221_v18  ;;  %v5187_v27 = vld [vmem:[#allocation2 + $0xb8] sm:$0x3]  ;;  %v5189_v28 = vld [vmem:[#allocation2 + $0xc0] sm:$0xff] }
  0x3f   : > { %282 = vst.msk [vmem:[#allocation2 + $0x159] sm:$0xff] %vm212_vm1, %v207_v9  ;;  %283 = vst.msk [vmem:[#allocation2 + $0x169] sm:$0xff] %vm212_vm1, %v208_v10  ;;  %v1226_v26 = vrot.slane %v5168_v21, 1  ;;  %v5191_v32 = vld [vmem:[#allocation2 + $0xc8] sm:$0xff]  ;;  %v1228_v36 = vrot.slane %v5187_v27, 1  ;;  %v1230_v42 = vrot.slane %v5189_v28, 1 }
  0x40   : > { %284 = vst.msk [vmem:[#allocation2 + $0x171] sm:$0xff] %vm212_vm1, %v209_v11  ;;  %6283 = vst [vmem:[#allocation17_spill] sm:$0xff] %v5158_v16  ;;  %v5200_v33 = vsel %vm1189_vm4, %v1221_v18, %v1223_v23  ;;  %v1231_v43 = vrot.slane %v5191_v32, 1  ;;  %v5210_v45 = vld [vmem:[#allocation2 + $0xd0] sm:$0x3]  ;;  %v5227_v57 = vld [vmem:[#allocation2 + $0xd8] sm:$0xff] }
  0x41   : > { %4182 = vmatmul.mubr.msk.f32.gmra.mrb[4].mxu0 %vm212_vm1, %v5115_v61  ;;  %3985 = vmatmul.mubr.msk.f32.gmra.mrb[6].mxu1 %vm212_vm1, %v5069_v50  ;;  %285 = vst.msk [vmem:[#allocation2 + $0x181] sm:$0xff] %vm212_vm1, %v210_v14  ;;  %286 = vst.msk [vmem:[#allocation2 + $0x189] sm:$0xff] %vm212_vm1, %v211_v15  ;;  %v5206_v38 = vsel %vm1189_vm4, %v1225_v25, %v1226_v26  ;;  %v5219_v47 = vsel %vm1189_vm4, %v1226_v26, %v1228_v36  ;;  %v1233_v54 = vrot.slane %v5210_v45, 1  ;;  %v5240_v0 = vld [vmem:[#allocation2 + $0xe0] sm:$0xff]  ;;  %v5242_v1 = vld [vmem:[#allocation2 + $0xf0] sm:$0xff] }
  0x42   : > { %4184 = vmatprep.mubr.msk.f32.mxu0 %vm212_vm1, %v5121_v63  ;;  %3987 = vmatprep.mubr.msk.f32.mxu1 %vm212_vm1, %v5102_v59  ;;  %6284 = vst [vmem:[#allocation18_spill] sm:$0xff] %v5177_v22  ;;  %6285 = vst [vmem:[#allocation19_spill] sm:$0xff] %v5183_v24  ;;  %v5225_v56 = vsel %vm1189_vm4, %v1230_v42, %v1231_v43  ;;  %v5252_v6 = vld [vmem:[#allocation2 + $0xf8] sm:$0xff]  ;;  %v5254_v7 = vld [vmem:[#allocation2 + $0x108] sm:$0xff]  ;;  %v1235_v23 = vrot.slane %v5227_v57, 1  ;;  %v1236_v25 = vrot.slane %v5240_v0, 1 }
  0x43   : > { %6286 = vst [vmem:[#allocation20_spill] sm:$0xff] %v5200_v33  ;;  %6287 = vst [vmem:[#allocation21_spill] sm:$0xff] %v5206_v38  ;;  %v5236_v62 = vsel %vm1189_vm4, %v1231_v43, %v1233_v54  ;;  %v5261_v8 = vld [vmem:[%s6219_s1 + $0x14] sm:$0xf]  ;;  %v5273_v10 = vld [vmem:[#allocation2 + $0x120] sm:$0xff] }
  0x44   : > { %6288 = vst [vmem:[#allocation22_spill] sm:$0xff] %v5219_v47  ;;  %6289 = vst [vmem:[#allocation23_spill] sm:$0xff] %v5225_v56  ;;  %v5271_v9 = vld [vmem:[#allocation2 + $0x110] sm:$0xff]  ;;  %v5287_v11 = vld [vmem:[#allocation2 + $0x138] sm:$0xff]  ;;  %v5341_v54 = vsel %vm1189_vm4, %v1235_v23, %v1236_v25 }
  0x45   : > { %4185 = vmatmul.mubr.msk.f32.gmra.mrb[6].mxu0 %vm212_vm1, %v5147_v12  ;;  %3988 = vmatmul.mubr.msk.f32.gmra.mrb[8].mxu1 %vm212_vm1, %v5104_v60  ;;  %6290 = vst [vmem:[#allocation24_spill] sm:$0xff] %v5236_v62  ;;  %v5297_v13 = vld [vmem:[#allocation2 + $0x140] sm:$0xff]  ;;  %v5299_v14 = vld [vmem:[#allocation2 + $0x150] sm:$0xff]  ;;  %v5325_v26 = vld [vmem:[#allocation2 + $0xe8] sm:$0x3] }
  0x46   : > { %4187 = vmatprep.mubr.msk.f32.mxu0 %vm212_vm1, %v5158_v16  ;;  %3990 = vmatprep.mubr.msk.f32.mxu1 %vm212_vm1, %v5125_v3  ;;  %v5309_v15 = vld [vmem:[#allocation2 + $0x158] sm:$0xff]  ;;  %v5311_v17 = vld [vmem:[#allocation2 + $0x168] sm:$0xff]  ;;  %v1238_v42 = vrot.slane %v5325_v26, 1  ;;  %6293 = vst [vmem:[#allocation27_spill] sm:$0xff] %v5341_v54  ;;  %v5405_v46 = vld [vmem:[#allocation2 + $0x130] sm:$0x3] }
  0x47   : > { %v5321_v18 = vld [vmem:[#allocation2 + $0x170] sm:$0xff]  ;;  %v5445_v41 = vld [vmem:[#allocation2 + $0x160] sm:$0x3] }
  0x48   : > { %v5327_v36 = vld [vmem:[#allocation2 + $0x180] sm:$0xff]  ;;  %v5338_v43 = vld [vmem:[#allocation2 + $0x188] sm:$0xff]  ;;  %v5359_v23 = vsel %vm1189_vm4, %v1236_v25, %v1238_v42  ;;  %6304 = vst [vmem:[#allocation38_spill] sm:$0xff] %v5445_v41 }
  0x49   : > { %4188 = vmatmul.mubr.msk.f32.gmra.mrb[8].mxu0 %vm212_vm1, %v5177_v22  ;;  %3991 = vmatmul.mubr.msk.f32.gmra.mrb[10].mxu1 %vm212_vm1, %v5129_v5  ;;  %6291 = vst [vmem:[#allocation25_spill] sm:$0xff] %v5327_v36  ;;  %6292 = vst [vmem:[#allocation26_spill] sm:$0xff] %v5338_v43 }
  0x4a   : > { %4190 = vmatprep.mubr.msk.f32.mxu0 %vm212_vm1, %v5183_v24  ;;  %3993 = vmatprep.mubr.msk.f32.mxu1 %vm212_vm1, %v5166_v20  ;;  %6294 = vst [vmem:[#allocation28_spill] sm:$0xff] %v5359_v23 }
  0x4d   : > { %4191 = vmatmul.mubr.msk.f32.gmra.mrb[10].mxu0 %vm212_vm1, %v5200_v33  ;;  %3994 = vmatmul.mubr.msk.f32.gmra.mrb[12].mxu1 %vm212_vm1, %v5168_v21 }
  0x4e   : > { %4193 = vmatprep.mubr.msk.f32.mxu0 %vm212_vm1, %v5206_v38  ;;  %3996 = vmatprep.mubr.msk.f32.mxu1 %vm212_vm1, %v5189_v28 }
  0x51   : > { %4194 = vmatmul.mubr.msk.f32.gmra.mrb[12].mxu0 %vm212_vm1, %v5219_v47  ;;  %3997 = vmatmul.mubr.msk.f32.gmra.mrb[14].mxu1 %vm212_vm1, %v5191_v32 }
  0x52   : > { %4196 = vmatprep.mubr.msk.f32.mxu0 %vm212_vm1, %v5225_v56  ;;  %3999 = vmatprep.mubr.msk.f32.mxu1 %vm212_vm1, %v5227_v57 }
  0x55   : > { %4197 = vmatmul.mubr.msk.f32.gmra.mrb[14].mxu0 %vm212_vm1, %v5236_v62  ;;  %4000 = vmatmul.mubr.msk.f32.gmra.mrb[16].mxu1 %vm212_vm1, %v5240_v0 }
  0x56   : > { %4225 = vmatprep.mubr.msk.f32.mxu0 %vm212_vm1, %v5076_v51  ;;  %4002 = vmatprep.mubr.msk.f32.mxu1 %vm212_vm1, %v5242_v1 }
  0x59   : > { %4226 = vmatmul.mubr.msk.f32.vlgmr.msra.gmra.mrb[0].mxu0 %vm212_vm1, %v5088_v53  ;;  %4003 = vmatmul.mubr.msk.f32.gmra.mrb[18].mxu1 %vm212_vm1, %v5252_v6  ;;  %v5383_v53 = vld [vmem:[%s6219_s1 + $0x4] sm:$0xf] }
  0x5a   : > { %4274 = vmatpush3.msk.msra.mxu0 %vm440_vm0, %v5081_v52  ;;  %4228 = vmatprep.mubr.msk.f32.mxu0 %vm212_vm1, %v5096_v55  ;;  %v5285_v52 = vld [vmem:[#allocation2 + $0x128] sm:$0xff]  ;;  %v1246_v55 = vrot.slane %v5271_v9, 1 }
  0x5b   : > { %4005 = vmatprep.mubr.msk.f32.mxu1 %vm212_vm1, %v5254_v7  ;;  %4323 = vmatprep.subr.msk.mxu0 %vm440_vm0, %v5261_v8 }
  0x5d   : > { %4229 = vmatmul.mubr.msk.f32.gmra.mrb[2].mxu0 %vm212_vm1, %v5115_v61  ;;  %4006 = vmatmul.mubr.msk.f32.gmra.mrb[20].mxu1 %vm212_vm1, %v5271_v9  ;;  %v1245_v61 = vrot.slane %v5254_v7, 1 }
  0x5e   : > { %4231 = vmatprep.mubr.msk.f32.mxu0 %vm212_vm1, %v5121_v63  ;;  %4008 = vmatprep.mubr.msk.f32.mxu1 %vm212_vm1, %v5273_v10 }
  0x61   : > { %4232 = vmatmul.mubr.msk.f32.gmra.mrb[4].mxu0 %vm212_vm1, %v5147_v12  ;;  %4009 = vmatmul.mubr.msk.f32.gmra.mrb[22].mxu1 %vm212_vm1, %v5285_v52  ;;  %v5362_v12 = vld [vmem:[#allocation2 + $0x10] sm:$0x3] }
  0x62   : > { %4234 = vmatprep.mubr.msk.f32.mxu0 %vm212_vm1, %v5158_v16  ;;  %4011 = vmatprep.mubr.msk.f32.mxu1 %vm212_vm1, %v5287_v11  ;;  %v1193_v25 = vrot.slane %v5362_v12, 1 }
  0x65   : > { %4235 = vmatmul.mubr.msk.f32.gmra.mrb[6].mxu0 %vm212_vm1, %v5177_v22  ;;  %4012 = vmatmul.mubr.msk.f32.gmra.mrb[24].mxu1 %vm212_vm1, %v5297_v13  ;;  %v5352_v22 = vld [vmem:[#allocation2 + $0x8] sm:$0xff] }
  0x66   : > { %4237 = vmatprep.mubr.msk.f32.mxu0 %vm212_vm1, %v5183_v24  ;;  %4014 = vmatprep.mubr.msk.f32.mxu1 %vm212_vm1, %v5299_v14  ;;  %v5347_v24 = vld [vmem:[#allocation2 + $0x100] sm:$0x3]  ;;  %v1191_v63 = vrot.slane %v5352_v22, 1 }
  0x67   : > { %v1243_v16 = vrot.slane %v5347_v24, 1 }
  0x69   : > { %4238 = vmatmul.mubr.msk.f32.gmra.mrb[8].mxu0 %vm212_vm1, %v5200_v33  ;;  %4015 = vmatmul.mubr.msk.f32.gmra.mrb[26].mxu1 %vm212_vm1, %v5309_v15  ;;  %v1241_v33 = vrot.slane %v5252_v6, 1 }
  0x6a   : > { %4240 = vmatprep.mubr.msk.f32.mxu0 %vm212_vm1, %v5206_v38  ;;  %4017 = vmatprep.mubr.msk.f32.mxu1 %vm212_vm1, %v5311_v17  ;;  %v5343_v38 = vld [vmem:[#allocation2] sm:$0xff] }
  0x6d   : > { %4241 = vmatmul.mubr.msk.f32.gmra.mrb[10].mxu0 %vm212_vm1, %v5219_v47  ;;  %4018 = vmatmul.mubr.msk.f32.gmra.mrb[28].mxu1 %vm212_vm1, %v5321_v18  ;;  %v1240_v47 = vrot.slane %v5242_v1, 1 }
  0x6e   : > { %4243 = vmatprep.mubr.msk.f32.mxu0 %vm212_vm1, %v5225_v56  ;;  %4020 = vmatprep.mubr.msk.f32.mxu1 %vm212_vm1, %v5327_v36  ;;  %v1190_v56 = vrot.slane %v5343_v38, 1 }
  0x70   : > { %v5376_v42 = vsel %vm1189_vm4, %v1190_v56, %v1191_v63  ;;  %v5393_v56 = vsel %vm1189_vm4, %v1241_v33, %v1243_v16 }
  0x71   : > { %4244 = vmatmul.mubr.msk.f32.gmra.mrb[12].mxu0 %vm212_vm1, %v5236_v62  ;;  %4021 = vmatmul.mubr.msk.f32.gmra.mrb[30].mxu1 %vm212_vm1, %v5338_v43  ;;  %v5368_v62 = vsel %vm1189_vm4, %v1240_v47, %v1241_v33  ;;  %6296 = vst [vmem:[#allocation30_spill] sm:$0xff] %v5376_v42  ;;  %v5386_v47 = vsel %vm1189_vm4, %v1191_v63, %v1193_v25  ;;  %6298 = vst [vmem:[#allocation32_spill] sm:$0xff] %v5393_v56  ;;  %v1250_v25 = vrot.slane %v5273_v10, 1  ;;  %v5483_v42 = vld [vmem:[#allocation2 + $0x190] sm:$0x3] }
  0x72   : > { %4246 = vmatprep.mubr.msk.f32.mxu0 %vm212_vm1, %v5341_v54  ;;  %4025 = vmatprep.mubr.msk.f32.mxu1 %vm212_vm1, %v5343_v38  ;;  %6295 = vst [vmem:[#allocation29_spill] sm:$0xff] %v5368_v62  ;;  %v5372_v54 = vld [vmem:[#allocation2 + $0x118] sm:$0x3]  ;;  %6297 = vst [vmem:[#allocation31_spill] sm:$0xff] %v5386_v47  ;;  %v5401_v63 = vsel %vm1189_vm4, %v1245_v61, %v1246_v55  ;;  %v1253_v61 = vrot.slane %v5405_v46, 1  ;;  %v1255_v33 = vrot.slane %v5287_v11, 1 }
  0x73   : > { %v1248_v51 = vrot.slane %v5372_v54, 1  ;;  %6299 = vst [vmem:[#allocation33_spill] sm:$0xff] %v5401_v63  ;;  %v5464_v47 = vld [vmem:[#allocation2 + $0x178] sm:$0x3] }
  0x75   : > { %4247 = vmatmul.mubr.msk.f32.gmra.mrb[14].mxu0 %vm212_vm1, %v5359_v23  ;;  %4026 = vmatmul.mubr.msk.f32.vlgmr.msra.gmra.mrb[0].mxu1 %vm212_vm1, %v5352_v22  ;;  %v1251_v23 = vrot.slane %v5285_v52, 1 }
  0x76   : > { %4249 = vmatprep.mubr.msk.f32.mxu0 %vm212_vm1, %v5368_v62  ;;  %4028 = vmatprep.mubr.msk.f32.mxu1 %vm212_vm1, %v5017_v29  ;;  %v5426_v62 = vld [vmem:[#allocation2 + $0x148] sm:$0x3] }
  0x77   : > { %4074 = vmatpush3.msk.msra.mxu1 %vm440_vm0, %v5035_v35  ;;  %v5416_v35 = vsel %vm1189_vm4, %v1246_v55, %v1248_v51  ;;  %v5422_v16 = vsel %vm1189_vm4, %v1250_v25, %v1251_v23  ;;  %v5435_v51 = vsel %vm1189_vm4, %v1251_v23, %v1253_v61  ;;  %v1258_v55 = vrot.slane %v5426_v62, 1 }
  0x78   : > { %4123 = vmatprep.subr.msk.mxu1 %vm440_vm0, %v5383_v53  ;;  %6300 = vst [vmem:[#allocation34_spill] sm:$0xff] %v5416_v35  ;;  %6301 = vst [vmem:[#allocation35_spill] sm:$0xff] %v5422_v16  ;;  %v1263_v61 = vrot.slane %v5445_v41, 1  ;;  %v5485_v41 = vld [vmem:[#allocation2 + $0x198] sm:$0xff] }
  0x79   : > { %4250 = vmatmul.mubr.msk.f32.gmra.mrb[16].mxu0 %vm212_vm1, %v5393_v56  ;;  %4029 = vmatmul.mubr.msk.f32.gmra.mrb[2].mxu1 %vm212_vm1, %v5019_v30  ;;  %v1256_v56 = vrot.slane %v5297_v13, 1  ;;  %6302 = vst [vmem:[#allocation36_spill] sm:$0xff] %v5435_v51 }
  0x7a   : > { %4252 = vmatprep.mubr.msk.f32.mxu0 %vm212_vm1, %v5401_v63  ;;  %4031 = vmatprep.mubr.msk.f32.mxu1 %vm212_vm1, %v5021_v31  ;;  %v1260_v63 = vrot.slane %v5299_v14, 1 }
  0x7b   : > { %v5441_v25 = vsel %vm1189_vm4, %v1255_v33, %v1256_v56  ;;  %v5454_v23 = vsel %vm1189_vm4, %v1256_v56, %v1258_v55  ;;  %v1270_v55 = vrot.slane %v5327_v36, 1  ;;  %v5506_v36 = vld [vmem:[#allocation2 + $0x1a8] sm:$0x3] }
  0x7c   : > { %6303 = vst [vmem:[#allocation37_spill] sm:$0xff] %v5441_v25  ;;  %6305 = vst [vmem:[#allocation39_spill] sm:$0xff] %v5454_v23 }
  0x7d   : > { %4253 = vmatmul.mubr.msk.f32.gmra.mrb[18].mxu0 %vm212_vm1, %v5416_v35  ;;  %4032 = vmatmul.mubr.msk.f32.gmra.mrb[4].mxu1 %vm212_vm1, %v5040_v37  ;;  %v1261_v35 = vrot.slane %v5309_v15, 1 }
  0x7e   : > { %4255 = vmatprep.mubr.msk.f32.mxu0 %vm212_vm1, %v5422_v16  ;;  %4034 = vmatprep.mubr.msk.f32.mxu1 %vm212_vm1, %v5043_v39  ;;  %v1265_v16 = vrot.slane %v5311_v17, 1 }
  0x7f   : > { %v5460_v33 = vsel %vm1189_vm4, %v1260_v63, %v1261_v35  ;;  %v5473_v56 = vsel %vm1189_vm4, %v1261_v35, %v1263_v61  ;;  %v1268_v63 = vrot.slane %v5464_v47, 1 }
  0x80   : > { %6306 = vst [vmem:[#allocation40_spill] sm:$0xff] %v5460_v33  ;;  %6307 = vst [vmem:[#allocation41_spill] sm:$0xff] %v5473_v56 }
  0x81   : > { %4256 = vmatmul.mubr.msk.f32.gmra.mrb[20].mxu0 %vm212_vm1, %v5435_v51  ;;  %4035 = vmatmul.mubr.msk.f32.gmra.mrb[6].mxu1 %vm212_vm1, %v5056_v44  ;;  %v1266_v51 = vrot.slane %v5321_v18, 1 }
  0x82   : > { %4258 = vmatprep.mubr.msk.f32.mxu0 %vm212_vm1, %v5441_v25  ;;  %4037 = vmatprep.mubr.msk.f32.mxu1 %vm212_vm1, %v5065_v48  ;;  %v1271_v25 = vrot.slane %v5338_v43, 1  ;;  %v1275_v43 = vrot.slane %v5485_v41, 1 }
  0x83   : > { %v5496_v35 = vsel %vm1189_vm4, %v1266_v51, %v1268_v63  ;;  %v1278_v63 = vrot.slane %v5506_v36, 1 }
  0x84   : > { %6309 = vst [vmem:[#allocation43_spill] sm:$0xff] %v5496_v35  ;;  %v5502_v61 = vsel %vm1189_vm4, %v1270_v55, %v1271_v25  ;;  %v2139_v55 = vrot.slane %v5343_v38, 2  ;;  %v2142_v38 = vrot.slane %v5362_v12, 2  ;;  %v2147_v12 = vrot.slane %v5030_v34, 2 }
  0x85   : > { %4259 = vmatmul.mubr.msk.f32.gmra.mrb[22].mxu0 %vm212_vm1, %v5454_v23  ;;  %4038 = vmatmul.mubr.msk.f32.gmra.mrb[8].mxu1 %vm212_vm1, %v5069_v50  ;;  %v5481_v23 = vsel %vm1189_vm4, %v1265_v16, %v1266_v51  ;;  %v1273_v16 = vrot.slane %v5483_v42, 1  ;;  %6310 = vst [vmem:[#allocation44_spill] sm:$0xff] %v5502_v61 }
  0x86   : > { %4261 = vmatprep.mubr.msk.f32.mxu0 %vm212_vm1, %v5460_v33  ;;  %4040 = vmatprep.mubr.msk.f32.mxu1 %vm212_vm1, %v5102_v59  ;;  %6308 = vst [vmem:[#allocation42_spill] sm:$0xff] %v5481_v23  ;;  %v5487_v33 = vld [vmem:[#allocation2 + $0x1a0] sm:$0xff] }
  0x87   : > { %v5515_v51 = vsel %vm1189_vm4, %v1271_v25, %v1273_v16  ;;  %v2145_v16 = vrot.slane %v5019_v30, 2 }
  0x88   : > { %6311 = vst [vmem:[#allocation45_spill] sm:$0xff] %v5515_v51 }
  0x89   : > { %4262 = vmatmul.mubr.msk.f32.gmra.mrb[24].mxu0 %vm212_vm1, %v5473_v56  ;;  %4041 = vmatmul.mubr.msk.f32.gmra.mrb[10].mxu1 %vm212_vm1, %v5104_v60  ;;  %v1276_v56 = vrot.slane %v5487_v33, 1  ;;  %v5559_v34 = vsel %vm2138_vm5, %v2145_v16, %v2147_v12 }
  0x8a   : > { %4264 = vmatprep.mubr.msk.f32.mxu0 %vm212_vm1, %v5481_v23  ;;  %4043 = vmatprep.mubr.msk.f32.mxu1 %vm212_vm1, %v5125_v3 }
  0x8b   : > { %v1277_v23 = vsel %vm1189_vm4, %v1275_v43, %v1276_v56  ;;  %v1279_v25 = vsel %vm1189_vm4, %v1276_v56, %v1278_v63  ;;  %v2149_v56 = vrot.slane %v5021_v31, 2  ;;  %v5552_v63 = vld [vmem:[%s6219_s1 + $0x20] sm:$0xf] }
  0x8d   : > { %4265 = vmatmul.mubr.msk.f32.gmra.mrb[26].mxu0 %vm212_vm1, %v5496_v35  ;;  %4044 = vmatmul.mubr.msk.f32.gmra.mrb[12].mxu1 %vm212_vm1, %v5129_v5  ;;  %v2140_v35 = vrot.slane %v5352_v22, 2  ;;  %v2144_v22 = vrot.slane %v5017_v29, 2  ;;  %v2150_v29 = vrot.slane %v5040_v37, 2 }
  0x8e   : > { %4267 = vmatprep.mubr.msk.f32.mxu0 %vm212_vm1, %v5502_v61  ;;  %4046 = vmatprep.mubr.msk.f32.mxu1 %vm212_vm1, %v5166_v20  ;;  %v2185_v61 = vrot.slane %v5240_v0, 2 }
  0x8f   : > { %v2141_v43 = vsel %vm2138_vm5, %v2139_v55, %v2140_v35  ;;  %v5546_v30 = vsel %vm2138_vm5, %v2144_v22, %v2145_v16  ;;  %v5567_v55 = vsel %vm2138_vm5, %v2149_v56, %v2150_v29  ;;  %v2159_v22 = vrot.slane %v5065_v48, 2 }
  0x90   : > { %v2160_v16 = vrot.slane %v5069_v50, 2  ;;  %v2164_v56 = vrot.slane %v5102_v59, 2 }
  0x91   : > { %4268 = vmatmul.mubr.msk.f32.gmra.mrb[28].mxu0 %vm212_vm1, %v5515_v51  ;;  %4047 = vmatmul.mubr.msk.f32.gmra.mrb[14].mxu1 %vm212_vm1, %v5168_v21  ;;  %v2180_v51 = vrot.slane %v5191_v32, 2 }
  0x92   : > { %4270 = vmatprep.mubr.msk.f32.mxu0 %vm212_vm1, %v1277_v23  ;;  %4049 = vmatprep.mubr.msk.f32.mxu1 %vm212_vm1, %v5189_v28  ;;  %v2143_v23 = vsel %vm2138_vm5, %v2140_v35, %v2142_v38  ;;  %v2152_v35 = vrot.slane %v5045_v40, 2  ;;  %v2157_v38 = vrot.slane %v5067_v49, 2  ;;  %v5603_v12 = vsel %vm2138_vm5, %v2159_v22, %v2160_v16 }
  0x93   : > { %v2172_v22 = vrot.slane %v5162_v19, 2 }
  0x94   : > { %v5580_v40 = vsel %vm2138_vm5, %v2150_v29, %v2152_v35  ;;  %v2165_v29 = vrot.slane %v5104_v60, 2  ;;  %v2167_v35 = vrot.slane %v5127_v4, 2 }
  0x95   : > { %4271 = vmatmul.mubr.msk.f32.gmra.mrb[30].mxu0 %vm212_vm1, %v1279_v25  ;;  %4050 = vmatmul.mubr.msk.f32.gmra.mrb[16].mxu1 %vm212_vm1, %v5191_v32  ;;  %v2154_v25 = vrot.slane %v5043_v39, 2 }
  0x96   : > { %4275 = vmatprep.mubr.msk.f32.mxu0 %vm212_vm1, %v2141_v43  ;;  %4052 = vmatprep.mubr.msk.f32.mxu1 %vm212_vm1, %v5227_v57  ;;  %v5631_v4 = vsel %vm2138_vm5, %v2165_v29, %v2167_v35 }
  0x99   : > { %4276 = vmatmul.mubr.msk.f32.vlgmr.msra.gmra.mrb[0].mxu0 %vm212_vm1, %v2143_v23  ;;  %4053 = vmatmul.mubr.msk.f32.gmra.mrb[18].mxu1 %vm212_vm1, %v5240_v0  ;;  %v2162_v23 = vrot.slane %v5100_v58, 2 }
  0x9a   : > { %4324 = vmatpush3.msk.msra.mxu0 %vm440_vm0, %v5261_v8  ;;  %4278 = vmatprep.mubr.msk.f32.mxu0 %vm212_vm1, %v5546_v30  ;;  %v2155_v8 = vrot.slane %v5056_v44, 2 }
  0x9b   : > { %4055 = vmatprep.mubr.msk.f32.mxu1 %vm212_vm1, %v5242_v1  ;;  %4373 = vmatprep.subr.msk.mxu0 %vm440_vm0, %v5552_v63  ;;  %v5614_v58 = vsel %vm2138_vm5, %v2160_v16, %v2162_v23  ;;  %v2174_v23 = vrot.slane %v5166_v20, 2 }
  0x9c   : > { %v5586_v43 = vsel %vm2138_vm5, %v2154_v25, %v2155_v8  ;;  %v5597_v49 = vsel %vm2138_vm5, %v2155_v8, %v2157_v38  ;;  %v5620_v25 = vsel %vm2138_vm5, %v2164_v56, %v2165_v29  ;;  %v2169_v8 = vrot.slane %v5125_v3, 2 }
  0x9d   : > { %4279 = vmatmul.mubr.msk.f32.gmra.mrb[2].mxu0 %vm212_vm1, %v5559_v34  ;;  %4056 = vmatmul.mubr.msk.f32.gmra.mrb[20].mxu1 %vm212_vm1, %v5252_v6  ;;  %v2170_v38 = vrot.slane %v5129_v5, 2  ;;  %v2175_v56 = vrot.slane %v5168_v21, 2  ;;  %v2177_v29 = vrot.slane %v5187_v27, 2 }
  0x9e   : > { %4281 = vmatprep.mubr.msk.f32.mxu0 %vm212_vm1, %v5567_v55  ;;  %4058 = vmatprep.mubr.msk.f32.mxu1 %vm212_vm1, %v5254_v7 }
  0x9f   : > { %v5637_v16 = vsel %vm2138_vm5, %v2169_v8, %v2170_v38  ;;  %v5648_v19 = vsel %vm2138_vm5, %v2170_v38, %v2172_v22  ;;  %v5654_v35 = vsel %vm2138_vm5, %v2174_v23, %v2175_v56  ;;  %v2179_v8 = vrot.slane %v5189_v28, 2 }
  0xa0   : > { %v5665_v27 = vsel %vm2138_vm5, %v2175_v56, %v2177_v29  ;;  %v2182_v38 = vrot.slane %v5210_v45, 2  ;;  %v2184_v23 = vrot.slane %v5227_v57, 2  ;;  %v2189_v29 = vrot.slane %v5242_v1, 2 }
  0xa1   : > { %4282 = vmatmul.mubr.msk.f32.gmra.mrb[4].mxu0 %vm212_vm1, %v5580_v40  ;;  %4059 = vmatmul.mubr.msk.f32.gmra.mrb[22].mxu1 %vm212_vm1, %v5271_v9  ;;  %v5671_v22 = vsel %vm2138_vm5, %v2179_v8, %v2180_v51  ;;  %v2200_v8 = vrot.slane %v5285_v52, 2 }
  0xa2   : > { %4284 = vmatprep.mubr.msk.f32.mxu0 %vm212_vm1, %v5586_v43  ;;  %4061 = vmatprep.mubr.msk.f32.mxu1 %vm212_vm1, %v5273_v10  ;;  %v5682_v45 = vsel %vm2138_vm5, %v2180_v51, %v2182_v38  ;;  %v5690_v56 = vsel %vm2138_vm5, %v2184_v23, %v2185_v61  ;;  %v2195_v51 = vrot.slane %v5271_v9, 2  ;;  %v2204_v38 = vrot.slane %v5287_v11, 2 }
  0xa3   : > { %v2205_v23 = vrot.slane %v5297_v13, 2 }
  0xa5   : > { %4285 = vmatmul.mubr.msk.f32.gmra.mrb[6].mxu0 %vm212_vm1, %v5597_v49  ;;  %4062 = vmatmul.mubr.msk.f32.gmra.mrb[24].mxu1 %vm212_vm1, %v5285_v52 }
  0xa6   : > { %4287 = vmatprep.mubr.msk.f32.mxu0 %vm212_vm1, %v5603_v12  ;;  %4064 = vmatprep.mubr.msk.f32.mxu1 %vm212_vm1, %v5287_v11 }
  0xa9   : > { %4288 = vmatmul.mubr.msk.f32.gmra.mrb[8].mxu0 %vm212_vm1, %v5614_v58  ;;  %4065 = vmatmul.mubr.msk.f32.gmra.mrb[26].mxu1 %vm212_vm1, %v5297_v13 }
  0xaa   : > { %4290 = vmatprep.mubr.msk.f32.mxu0 %vm212_vm1, %v5620_v25  ;;  %4067 = vmatprep.mubr.msk.f32.mxu1 %vm212_vm1, %v5299_v14 }
  0xad   : > { %4291 = vmatmul.mubr.msk.f32.gmra.mrb[10].mxu0 %vm212_vm1, %v5631_v4  ;;  %4068 = vmatmul.mubr.msk.f32.gmra.mrb[28].mxu1 %vm212_vm1, %v5309_v15 }
  0xae   : > { %4293 = vmatprep.mubr.msk.f32.mxu0 %vm212_vm1, %v5637_v16  ;;  %4070 = vmatprep.mubr.msk.f32.mxu1 %vm212_vm1, %v5311_v17 }
  0xb1   : > { %4294 = vmatmul.mubr.msk.f32.gmra.mrb[12].mxu0 %vm212_vm1, %v5648_v19  ;;  %4071 = vmatmul.mubr.msk.f32.gmra.mrb[30].mxu1 %vm212_vm1, %v5321_v18 }
  0xb2   : > { %4296 = vmatprep.mubr.msk.f32.mxu0 %vm212_vm1, %v5654_v35  ;;  %4075 = vmatprep.mubr.msk.f32.mxu1 %vm212_vm1, %v5021_v31  ;;  %v2187_v31 = vrot.slane %v5325_v26, 2 }
  0xb5   : > { %4297 = vmatmul.mubr.msk.f32.gmra.mrb[14].mxu0 %vm212_vm1, %v5665_v27  ;;  %4076 = vmatmul.mubr.msk.f32.vlgmr.msra.gmra.mrb[0].mxu1 %vm212_vm1, %v5040_v37  ;;  %v2190_v37 = vrot.slane %v5252_v6, 2 }
  0xb6   : > { %4299 = vmatprep.mubr.msk.f32.mxu0 %vm212_vm1, %v5671_v22  ;;  %4078 = vmatprep.mubr.msk.f32.mxu1 %vm212_vm1, %v5043_v39  ;;  %v5703_v39 = vsel %vm2138_vm5, %v2185_v61, %v2187_v31  ;;  %v2199_v61 = vrot.slane %v5273_v10, 2  ;;  %v2209_v31 = vrot.slane %v5299_v14, 2 }
  0xb7   : > { %4124 = vmatpush3.msk.msra.mxu1 %vm440_vm0, %v5383_v53  ;;  %v2192_v53 = vrot.slane %v5347_v24, 2  ;;  %v5709_v26 = vsel %vm2138_vm5, %v2189_v29, %v2190_v37  ;;  %v2210_v29 = vrot.slane %v5309_v15, 2 }
  0xb8   : > { %4423 = vmatprep.subr.msk.mxu1 %vm440_vm0, %v4910_v2  ;;  %v2194_v2 = vrot.slane %v5254_v7, 2 }
  0xb9   : > { %4300 = vmatmul.mubr.msk.f32.gmra.mrb[16].mxu0 %vm212_vm1, %v5682_v45  ;;  %4079 = vmatmul.mubr.msk.f32.gmra.mrb[2].mxu1 %vm212_vm1, %v5056_v44  ;;  %v5720_v44 = vsel %vm2138_vm5, %v2190_v37, %v2192_v53  ;;  %v5777_v37 = vsel %vm2138_vm5, %v2209_v31, %v2210_v29  ;;  %v2214_v53 = vrot.slane %v5311_v17, 2  ;;  %v6333_v31 = vld [vmem:[#allocation27_spill] sm:$0xff] }
  0xba   : > { %4302 = vmatprep.mubr.msk.f32.mxu0 %vm212_vm1, %v5690_v56  ;;  %4081 = vmatprep.mubr.msk.f32.mxu1 %vm212_vm1, %v5065_v48  ;;  %v2197_v48 = vrot.slane %v5372_v54, 2  ;;  %v5726_v24 = vsel %vm2138_vm5, %v2194_v2, %v2195_v51  ;;  %v5743_v54 = vsel %vm2138_vm5, %v2199_v61, %v2200_v8  ;;  %v2215_v2 = vrot.slane %v5321_v18, 2 }
  0xbb   : > { %v2222_v61 = vrot.slane %v5483_v42, 2  ;;  %v6332_v42 = vld [vmem:[#allocation24_spill] sm:$0xff] }
  0xbd   : > { %4303 = vmatmul.mubr.msk.f32.gmra.mrb[18].mxu0 %vm212_vm1, %v5703_v39  ;;  %4082 = vmatmul.mubr.msk.f32.gmra.mrb[4].mxu1 %vm212_vm1, %v5069_v50  ;;  %v5737_v50 = vsel %vm2138_vm5, %v2195_v51, %v2197_v48  ;;  %v5794_v51 = vsel %vm2138_vm5, %v2214_v53, %v2215_v2  ;;  %v6328_v48 = vld [vmem:[#allocation20_spill] sm:$0xff] }
  0xbe   : > { %4305 = vmatprep.mubr.msk.f32.mxu0 %vm212_vm1, %v5709_v26  ;;  %4084 = vmatprep.mubr.msk.f32.mxu1 %vm212_vm1, %v5102_v59  ;;  %v2202_v59 = vrot.slane %v5405_v46, 2 }
  0xc0   : > { %v5754_v46 = vsel %vm2138_vm5, %v2200_v8, %v2202_v59  ;;  %v6329_v8 = vld [vmem:[#allocation21_spill] sm:$0xff] }
  0xc1   : > { %4306 = vmatmul.mubr.msk.f32.gmra.mrb[20].mxu0 %vm212_vm1, %v5720_v44  ;;  %4085 = vmatmul.mubr.msk.f32.gmra.mrb[6].mxu1 %vm212_vm1, %v5104_v60  ;;  %v2207_v60 = vrot.slane %v5426_v62, 2 }
  0xc2   : > { %4308 = vmatprep.mubr.msk.f32.mxu0 %vm212_vm1, %v5726_v24  ;;  %4087 = vmatprep.mubr.msk.f32.mxu1 %vm212_vm1, %v5125_v3  ;;  %v5760_v3 = vsel %vm2138_vm5, %v2204_v38, %v2205_v23  ;;  %v6330_v38 = vld [vmem:[#allocation22_spill] sm:$0xff] }
  0xc5   : > { %4309 = vmatmul.mubr.msk.f32.gmra.mrb[22].mxu0 %vm212_vm1, %v5737_v50  ;;  %4088 = vmatmul.mubr.msk.f32.gmra.mrb[8].mxu1 %vm212_vm1, %v5129_v5  ;;  %v5771_v5 = vsel %vm2138_vm5, %v2205_v23, %v2207_v60  ;;  %v6331_v60 = vld [vmem:[#allocation23_spill] sm:$0xff] }
  0xc6   : > { %4311 = vmatprep.mubr.msk.f32.mxu0 %vm212_vm1, %v5743_v54  ;;  %4090 = vmatprep.mubr.msk.f32.mxu1 %vm212_vm1, %v5166_v20  ;;  %v6312_v20 = vld [vmem:[#allocation38_spill] sm:$0xff] }
  0xc7   : > { %v2212_v62 = vrot.slane %v6312_v20, 2  ;;  %v6335_v20 = vld [vmem:[#allocation29_spill] sm:$0xff] }
  0xc9   : > { %4312 = vmatmul.mubr.msk.f32.gmra.mrb[24].mxu0 %vm212_vm1, %v5754_v46  ;;  %4091 = vmatmul.mubr.msk.f32.gmra.mrb[10].mxu1 %vm212_vm1, %v5168_v21  ;;  %v5788_v21 = vsel %vm2138_vm5, %v2210_v29, %v2212_v62  ;;  %v6334_v29 = vld [vmem:[#allocation28_spill] sm:$0xff] }
  0xca   : > { %4314 = vmatprep.mubr.msk.f32.mxu0 %vm212_vm1, %v5760_v3  ;;  %4093 = vmatprep.mubr.msk.f32.mxu1 %vm212_vm1, %v5189_v28  ;;  %v2217_v28 = vrot.slane %v5464_v47, 2  ;;  %v6326_v47 = vld [vmem:[#allocation18_spill] sm:$0xff]  ;;  %v6336_v62 = vld [vmem:[#allocation32_spill] sm:$0xff] }
  0xcd   : > { %4315 = vmatmul.mubr.msk.f32.gmra.mrb[26].mxu0 %vm212_vm1, %v5771_v5  ;;  %4094 = vmatmul.mubr.msk.f32.gmra.mrb[12].mxu1 %vm212_vm1, %v5191_v32  ;;  %v5803_v32 = vsel %vm2138_vm5, %v2215_v2, %v2217_v28 }
  0xce   : > { %4317 = vmatprep.mubr.msk.f32.mxu0 %vm212_vm1, %v5777_v37  ;;  %4096 = vmatprep.mubr.msk.f32.mxu1 %vm212_vm1, %v5227_v57  ;;  %v6313_v57 = vld [vmem:[#allocation25_spill] sm:$0xff] }
  0xd1   : > { %4318 = vmatmul.mubr.msk.f32.gmra.mrb[28].mxu0 %vm212_vm1, %v5788_v21  ;;  %4097 = vmatmul.mubr.msk.f32.gmra.mrb[14].mxu1 %vm212_vm1, %v5240_v0  ;;  %v6314_v0 = vld [vmem:[#allocation26_spill] sm:$0xff] }
  0xd2   : > { %4320 = vmatprep.mubr.msk.f32.mxu0 %vm212_vm1, %v5794_v51  ;;  %4099 = vmatprep.mubr.msk.f32.mxu1 %vm212_vm1, %v5242_v1  ;;  %v6315_v1 = vld [vmem:[#allocation30_spill] sm:$0xff] }
  0xd5   : > { %4321 = vmatmul.mubr.msk.f32.gmra.mrb[30].mxu0 %vm212_vm1, %v5803_v32  ;;  %4100 = vmatmul.mubr.msk.f32.gmra.mrb[16].mxu1 %vm212_vm1, %v5252_v6  ;;  %v6316_v6 = vld [vmem:[#allocation31_spill] sm:$0xff] }
  0xd6   : > { %4325 = vmatprep.mubr.msk.f32.mxu0 %vm212_vm1, %v5546_v30  ;;  %4102 = vmatprep.mubr.msk.f32.mxu1 %vm212_vm1, %v5254_v7  ;;  %v6317_v7 = vld [vmem:[#allocation9_spill] sm:$0xff]  ;;  %v2219_v30 = vrot.slane %v6313_v57, 2 }
  0xd9   : > { %4326 = vmatmul.mubr.msk.f32.vlgmr.msra.gmra.mrb[0].mxu0 %vm212_vm1, %v5559_v34  ;;  %4103 = vmatmul.mubr.msk.f32.gmra.mrb[18].mxu1 %vm212_vm1, %v5271_v9  ;;  %v4728_v9 = vld [vmem:[%s6219_s1 + $0x10] sm:$0xf]  ;;  %v6327_v34 = vld [vmem:[#allocation19_spill] sm:$0xff] }
  0xda   : > { %4374 = vmatpush3.msk.msra.mxu0 %vm440_vm0, %v5552_v63  ;;  %4328 = vmatprep.mubr.msk.f32.mxu0 %vm212_vm1, %v5567_v55  ;;  %v2220_v63 = vrot.slane %v6314_v0, 2 }
  0xdb   : > { %4105 = vmatprep.mubr.msk.f32.mxu1 %vm212_vm1, %v5273_v10  ;;  %v6318_v10 = vld [vmem:[#allocation10_spill] sm:$0xff] }
  0xdc   : > { %v5937_v59 = vsel %vm2138_vm5, %v2219_v30, %v2220_v63  ;;  %v5946_v23 = vsel %vm2138_vm5, %v2220_v63, %v2222_v61 }
  0xdd   : > { %4329 = vmatmul.mubr.msk.f32.gmra.mrb[2].mxu0 %vm212_vm1, %v5580_v40  ;;  %4106 = vmatmul.mubr.msk.f32.gmra.mrb[20].mxu1 %vm212_vm1, %v5285_v52  ;;  %v6319_v52 = vld [vmem:[#allocation11_spill] sm:$0xff] }
  0xde   : > { %4331 = vmatprep.mubr.msk.f32.mxu0 %vm212_vm1, %v5586_v43  ;;  %4108 = vmatprep.mubr.msk.f32.mxu1 %vm212_vm1, %v5287_v11  ;;  %v6320_v11 = vld [vmem:[#allocation12_spill] sm:$0xff] }
  0xe1   : > { %4332 = vmatmul.mubr.msk.f32.gmra.mrb[4].mxu0 %vm212_vm1, %v5597_v49  ;;  %4109 = vmatmul.mubr.msk.f32.gmra.mrb[22].mxu1 %vm212_vm1, %v5297_v13  ;;  %v6321_v13 = vld [vmem:[#allocation13_spill] sm:$0xff] }
  0xe2   : > { %4334 = vmatprep.mubr.msk.f32.mxu0 %vm212_vm1, %v5603_v12  ;;  %4111 = vmatprep.mubr.msk.f32.mxu1 %vm212_vm1, %v5299_v14  ;;  %v6322_v14 = vld [vmem:[#allocation14_spill] sm:$0xff] }
  0xe5   : > { %4335 = vmatmul.mubr.msk.f32.gmra.mrb[6].mxu0 %vm212_vm1, %v5614_v58  ;;  %4112 = vmatmul.mubr.msk.f32.gmra.mrb[24].mxu1 %vm212_vm1, %v5309_v15  ;;  %v6323_v15 = vld [vmem:[#allocation15_spill] sm:$0xff] }
  0xe6   : > { %4337 = vmatprep.mubr.msk.f32.mxu0 %vm212_vm1, %v5620_v25  ;;  %4114 = vmatprep.mubr.msk.f32.mxu1 %vm212_vm1, %v5311_v17  ;;  %v6324_v17 = vld [vmem:[#allocation16_spill] sm:$0xff] }
  0xe9   : > { %4338 = vmatmul.mubr.msk.f32.gmra.mrb[8].mxu0 %vm212_vm1, %v5631_v4  ;;  %4115 = vmatmul.mubr.msk.f32.gmra.mrb[26].mxu1 %vm212_vm1, %v5321_v18  ;;  %v6325_v18 = vld [vmem:[#allocation17_spill] sm:$0xff] }
  0xea   : > { %4340 = vmatprep.mubr.msk.f32.mxu0 %vm212_vm1, %v5637_v16  ;;  %4117 = vmatprep.mubr.msk.f32.mxu1 %vm212_vm1, %v6313_v57 }
  0xed   : > { %4341 = vmatmul.mubr.msk.f32.gmra.mrb[10].mxu0 %vm212_vm1, %v5648_v19  ;;  %4118 = vmatmul.mubr.msk.f32.gmra.mrb[28].mxu1 %vm212_vm1, %v6314_v0 }
  0xee   : > { %4343 = vmatprep.mubr.msk.f32.mxu0 %vm212_vm1, %v5654_v35  ;;  %4120 = vmatprep.mubr.msk.f32.mxu1 %vm212_vm1, %v5485_v41 }
  0xf1   : > { %4344 = vmatmul.mubr.msk.f32.gmra.mrb[12].mxu0 %vm212_vm1, %v5665_v27  ;;  %4121 = vmatmul.mubr.msk.f32.gmra.mrb[30].mxu1 %vm212_vm1, %v5487_v33 }
  0xf2   : > { %4346 = vmatprep.mubr.msk.f32.mxu0 %vm212_vm1, %v5671_v22  ;;  %4125 = vmatprep.mubr.msk.f32.mxu1 %vm212_vm1, %v6315_v1 }
  0xf5   : > { %4347 = vmatmul.mubr.msk.f32.gmra.mrb[14].mxu0 %vm212_vm1, %v5682_v45  ;;  %4126 = vmatmul.mubr.msk.f32.vlgmr.msra.gmra.mrb[0].mxu1 %vm212_vm1, %v6316_v6 }
  0xf6   : > { %4349 = vmatprep.mubr.msk.f32.mxu0 %vm212_vm1, %v5690_v56  ;;  %4128 = vmatprep.mubr.msk.f32.mxu1 %vm212_vm1, %v6317_v7 }
  0xf7   : > { %4424 = vmatpush3.msk.msra.mxu1 %vm440_vm0, %v4728_v9 }
  0xf9   : > { %4350 = vmatmul.mubr.msk.f32.gmra.mrb[16].mxu0 %vm212_vm1, %v5703_v39  ;;  %4129 = vmatmul.mubr.msk.f32.gmra.mrb[2].mxu1 %vm212_vm1, %v6318_v10 }
  0xfa   : > { %4352 = vmatprep.mubr.msk.f32.mxu0 %vm212_vm1, %v5709_v26  ;;  %4131 = vmatprep.mubr.msk.f32.mxu1 %vm212_vm1, %v6319_v52 }
  0xfd   : > { %4353 = vmatmul.mubr.msk.f32.gmra.mrb[18].mxu0 %vm212_vm1, %v5720_v44  ;;  %4132 = vmatmul.mubr.msk.f32.gmra.mrb[4].mxu1 %vm212_vm1, %v6320_v11 }
  0xfe   : > { %4355 = vmatprep.mubr.msk.f32.mxu0 %vm212_vm1, %v5726_v24  ;;  %4134 = vmatprep.mubr.msk.f32.mxu1 %vm212_vm1, %v6321_v13 }
 0x101   : > { %4356 = vmatmul.mubr.msk.f32.gmra.mrb[20].mxu0 %vm212_vm1, %v5737_v50  ;;  %4135 = vmatmul.mubr.msk.f32.gmra.mrb[6].mxu1 %vm212_vm1, %v6322_v14 }
 0x102   : > { %4358 = vmatprep.mubr.msk.f32.mxu0 %vm212_vm1, %v5743_v54  ;;  %4137 = vmatprep.mubr.msk.f32.mxu1 %vm212_vm1, %v6323_v15 }
 0x105   : > { %4359 = vmatmul.mubr.msk.f32.gmra.mrb[22].mxu0 %vm212_vm1, %v5754_v46  ;;  %4138 = vmatmul.mubr.msk.f32.gmra.mrb[8].mxu1 %vm212_vm1, %v6324_v17 }
 0x106   : > { %4361 = vmatprep.mubr.msk.f32.mxu0 %vm212_vm1, %v5760_v3  ;;  %4140 = vmatprep.mubr.msk.f32.mxu1 %vm212_vm1, %v6325_v18 }
 0x109   : > { %4362 = vmatmul.mubr.msk.f32.gmra.mrb[24].mxu0 %vm212_vm1, %v5771_v5  ;;  %4141 = vmatmul.mubr.msk.f32.gmra.mrb[10].mxu1 %vm212_vm1, %v6326_v47 }
 0x10a   : > { %4364 = vmatprep.mubr.msk.f32.mxu0 %vm212_vm1, %v5777_v37  ;;  %4143 = vmatprep.mubr.msk.f32.mxu1 %vm212_vm1, %v6327_v34 }
 0x10d   : > { %4365 = vmatmul.mubr.msk.f32.gmra.mrb[26].mxu0 %vm212_vm1, %v5788_v21  ;;  %4144 = vmatmul.mubr.msk.f32.gmra.mrb[12].mxu1 %vm212_vm1, %v6328_v48 }
 0x10e   : > { %4367 = vmatprep.mubr.msk.f32.mxu0 %vm212_vm1, %v5794_v51  ;;  %4146 = vmatprep.mubr.msk.f32.mxu1 %vm212_vm1, %v6329_v8 }
 0x111   : > { %4368 = vmatmul.mubr.msk.f32.gmra.mrb[28].mxu0 %vm212_vm1, %v5803_v32  ;;  %4147 = vmatmul.mubr.msk.f32.gmra.mrb[14].mxu1 %vm212_vm1, %v6330_v38 }
 0x112   : > { %4370 = vmatprep.mubr.msk.f32.mxu0 %vm212_vm1, %v5937_v59  ;;  %4149 = vmatprep.mubr.msk.f32.mxu1 %vm212_vm1, %v6331_v60 }
 0x115   : > { %4371 = vmatmul.mubr.msk.f32.gmra.mrb[30].mxu0 %vm212_vm1, %v5946_v23  ;;  %4150 = vmatmul.mubr.msk.f32.gmra.mrb[16].mxu1 %vm212_vm1, %v6332_v42 }
 0x116   : > { %4375 = vmatprep.mubr.msk.f32.mxu0 %vm212_vm1, %v5567_v55  ;;  %4152 = vmatprep.mubr.msk.f32.mxu1 %vm212_vm1, %v6333_v31  ;;  %v6337_v55 = vld [vmem:[#allocation33_spill] sm:$0xff] }
 0x119   : > { %4376 = vmatmul.mubr.msk.f32.vlgmr.msra.gmra.mrb[0].mxu0 %vm212_vm1, %v5580_v40  ;;  %4153 = vmatmul.mubr.msk.f32.gmra.mrb[18].mxu1 %vm212_vm1, %v6334_v29  ;;  %v6338_v40 = vld [vmem:[#allocation34_spill] sm:$0xff] }
 0x11a   : > { %4378 = vmatprep.mubr.msk.f32.mxu0 %vm212_vm1, %v5586_v43  ;;  %4155 = vmatprep.mubr.msk.f32.mxu1 %vm212_vm1, %v6335_v20  ;;  %v6339_v43 = vld [vmem:[#allocation35_spill] sm:$0xff] }
 0x11d   : > { %4379 = vmatmul.mubr.msk.f32.gmra.mrb[2].mxu0 %vm212_vm1, %v5597_v49  ;;  %4156 = vmatmul.mubr.msk.f32.gmra.mrb[20].mxu1 %vm212_vm1, %v6336_v62  ;;  %v6340_v49 = vld [vmem:[#allocation36_spill] sm:$0xff] }
 0x11e   : > { %4381 = vmatprep.mubr.msk.f32.mxu0 %vm212_vm1, %v5603_v12  ;;  %4158 = vmatprep.mubr.msk.f32.mxu1 %vm212_vm1, %v6337_v55  ;;  %v6341_v12 = vld [vmem:[#allocation37_spill] sm:$0xff] }
 0x121   : > { %4382 = vmatmul.mubr.msk.f32.gmra.mrb[4].mxu0 %vm212_vm1, %v5614_v58  ;;  %4159 = vmatmul.mubr.msk.f32.gmra.mrb[22].mxu1 %vm212_vm1, %v6338_v40  ;;  %v6342_v58 = vld [vmem:[#allocation39_spill] sm:$0xff] }
 0x122   : > { %4384 = vmatprep.mubr.msk.f32.mxu0 %vm212_vm1, %v5620_v25  ;;  %4161 = vmatprep.mubr.msk.f32.mxu1 %vm212_vm1, %v6339_v43  ;;  %v6343_v25 = vld [vmem:[#allocation40_spill] sm:$0xff] }
 0x125   : > { %4385 = vmatmul.mubr.msk.f32.gmra.mrb[6].mxu0 %vm212_vm1, %v5631_v4  ;;  %4162 = vmatmul.mubr.msk.f32.gmra.mrb[24].mxu1 %vm212_vm1, %v6340_v49  ;;  %v6344_v4 = vld [vmem:[#allocation41_spill] sm:$0xff] }
 0x126   : > { %4387 = vmatprep.mubr.msk.f32.mxu0 %vm212_vm1, %v5637_v16  ;;  %4164 = vmatprep.mubr.msk.f32.mxu1 %vm212_vm1, %v6341_v12  ;;  %v6345_v16 = vld [vmem:[#allocation42_spill] sm:$0xff] }
 0x129   : > { %4388 = vmatmul.mubr.msk.f32.gmra.mrb[8].mxu0 %vm212_vm1, %v5648_v19  ;;  %4165 = vmatmul.mubr.msk.f32.gmra.mrb[26].mxu1 %vm212_vm1, %v6342_v58  ;;  %v6346_v19 = vld [vmem:[#allocation43_spill] sm:$0xff] }
 0x12a   : > { %4390 = vmatprep.mubr.msk.f32.mxu0 %vm212_vm1, %v5654_v35  ;;  %4167 = vmatprep.mubr.msk.f32.mxu1 %vm212_vm1, %v6343_v25  ;;  %v2224_v35 = vrot.slane %v5485_v41, 2  ;;  %v6348_v41 = vld [vmem:[#allocation45_spill] sm:$0xff] }
 0x12d   : > { %4391 = vmatmul.mubr.msk.f32.gmra.mrb[10].mxu0 %vm212_vm1, %v5665_v27  ;;  %4168 = vmatmul.mubr.msk.f32.gmra.mrb[28].mxu1 %vm212_vm1, %v6344_v4  ;;  %v2225_v27 = vrot.slane %v5487_v33, 2 }
 0x12e   : > { %4393 = vmatprep.mubr.msk.f32.mxu0 %vm212_vm1, %v5671_v22  ;;  %4170 = vmatprep.mubr.msk.f32.mxu1 %vm212_vm1, %v6345_v16  ;;  %v2227_v22 = vrot.slane %v5506_v36, 2 }
 0x130   : > { %v2228_v33 = vsel %vm2138_vm5, %v2225_v27, %v2227_v22 }
 0x131   : > { %4394 = vmatmul.mubr.msk.f32.gmra.mrb[12].mxu0 %vm212_vm1, %v5682_v45  ;;  %4171 = vmatmul.mubr.msk.f32.gmra.mrb[30].mxu1 %vm212_vm1, %v6346_v19  ;;  %v6347_v45 = vld [vmem:[#allocation44_spill] sm:$0xff] }
 0x132   : > { %4396 = vmatprep.mubr.msk.f32.mxu0 %vm212_vm1, %v5690_v56  ;;  %4199 = vmatprep.mubr.msk.f32.mxu1 %vm212_vm1, %v6333_v31  ;;  %v2226_v56 = vsel %vm2138_vm5, %v2224_v35, %v2225_v27 }
 0x135   : > { %4397 = vmatmul.mubr.msk.f32.gmra.mrb[14].mxu0 %vm212_vm1, %v5703_v39  ;;  %4200 = vmatmul.mubr.msk.f32.vlgmr.msra.gmra.mrb[16].mxu1 %vm212_vm1, %v6334_v29 }
 0x136   : > { %4399 = vmatprep.mubr.msk.f32.mxu0 %vm212_vm1, %v5709_v26  ;;  %4202 = vmatprep.mubr.msk.f32.mxu1 %vm212_vm1, %v6335_v20 }
 0x139   : > { %4400 = vmatmul.mubr.msk.f32.gmra.mrb[16].mxu0 %vm212_vm1, %v5720_v44  ;;  %4203 = vmatmul.mubr.msk.f32.gmra.mrb[18].mxu1 %vm212_vm1, %v6336_v62 }
 0x13a   : > { %4402 = vmatprep.mubr.msk.f32.mxu0 %vm212_vm1, %v5726_v24  ;;  %4205 = vmatprep.mubr.msk.f32.mxu1 %vm212_vm1, %v6337_v55 }
 0x13d   : > { %4403 = vmatmul.mubr.msk.f32.gmra.mrb[18].mxu0 %vm212_vm1, %v5737_v50  ;;  %4206 = vmatmul.mubr.msk.f32.gmra.mrb[20].mxu1 %vm212_vm1, %v6338_v40 }
 0x13e   : > { %4405 = vmatprep.mubr.msk.f32.mxu0 %vm212_vm1, %v5743_v54  ;;  %4208 = vmatprep.mubr.msk.f32.mxu1 %vm212_vm1, %v6339_v43 }
 0x141   : > { %4406 = vmatmul.mubr.msk.f32.gmra.mrb[20].mxu0 %vm212_vm1, %v5754_v46  ;;  %4209 = vmatmul.mubr.msk.f32.gmra.mrb[22].mxu1 %vm212_vm1, %v6340_v49 }
 0x142   : > { %4408 = vmatprep.mubr.msk.f32.mxu0 %vm212_vm1, %v5760_v3  ;;  %4211 = vmatprep.mubr.msk.f32.mxu1 %vm212_vm1, %v6341_v12 }
 0x145   : > { %4409 = vmatmul.mubr.msk.f32.gmra.mrb[22].mxu0 %vm212_vm1, %v5771_v5  ;;  %4212 = vmatmul.mubr.msk.f32.gmra.mrb[24].mxu1 %vm212_vm1, %v6342_v58 }
 0x146   : > { %4411 = vmatprep.mubr.msk.f32.mxu0 %vm212_vm1, %v5777_v37  ;;  %4214 = vmatprep.mubr.msk.f32.mxu1 %vm212_vm1, %v6343_v25 }
 0x149   : > { %4412 = vmatmul.mubr.msk.f32.gmra.mrb[24].mxu0 %vm212_vm1, %v5788_v21  ;;  %4215 = vmatmul.mubr.msk.f32.gmra.mrb[26].mxu1 %vm212_vm1, %v6344_v4 }
 0x14a   : > { %4414 = vmatprep.mubr.msk.f32.mxu0 %vm212_vm1, %v5794_v51  ;;  %4217 = vmatprep.mubr.msk.f32.mxu1 %vm212_vm1, %v6345_v16 }
 0x14d   : > { %4415 = vmatmul.mubr.msk.f32.gmra.mrb[26].mxu0 %vm212_vm1, %v5803_v32  ;;  %4218 = vmatmul.mubr.msk.f32.gmra.mrb[28].mxu1 %vm212_vm1, %v6346_v19 }
 0x14e   : > { %4417 = vmatprep.mubr.msk.f32.mxu0 %vm212_vm1, %v5937_v59  ;;  %4220 = vmatprep.mubr.msk.f32.mxu1 %vm212_vm1, %v6347_v45 }
 0x151   : > { %4418 = vmatmul.mubr.msk.f32.gmra.mrb[28].mxu0 %vm212_vm1, %v5946_v23  ;;  %4221 = vmatmul.mubr.msk.f32.gmra.mrb[30].mxu1 %vm212_vm1, %v6348_v41 }
 0x152   : > { %4420 = vmatprep.mubr.msk.f32.mxu0 %vm212_vm1, %v2226_v56 }
 0x155   : > { %4421 = vmatmul.mubr.msk.f32.gmra.mrb[30].mxu0 %vm212_vm1, %v2228_v33 }
 0x1c8   : > { %v4127_v39 = vpop.f32.mrb[0].mxu1 }
 0x1c9   : > { %v1415_v36 = vpop.f32.mrb[1].mxu1 }
 0x1cc   : > { %v4130_v26 = vpop.f32.mrb[2].mxu1 }
 0x1cd   : > { %v1425_v44 = vpop.f32.mrb[3].mxu1 }
 0x1d0   : > { %v4133_v24 = vpop.f32.mrb[4].mxu1 }
 0x1d1   : > { %v1435_v50 = vpop.f32.mrb[5].mxu1 }
 0x1d4   : > { %v4136_v54 = vpop.f32.mrb[6].mxu1 }
 0x1d5   : > { %v1445_v46 = vpop.f32.mrb[7].mxu1 }
 0x1d8   : > { %v4139_v3 = vpop.f32.mrb[8].mxu1 }
 0x1d9   : > { %v1455_v5 = vpop.f32.mrb[9].mxu1 }
 0x1dc   : > { %v6081_v37 = vpop.f32.mrb[10].mxu1 }
 0x1dd   : > { %v6083_v53 = vpop.f32.mrb[11].mxu1 }
 0x1e0   : > { %v6085_v2 = vpop.f32.mrb[12].mxu1 }
 0x1e1   : > { %v6087_v21 = vpop.f32.mrb[13].mxu1 }
 0x1e4   : > { %v6089_v28 = vpop.f32.mrb[14].mxu1 }
 0x1e5   : > { %v6091_v51 = vpop.f32.mrb[15].mxu1 }
 0x1ec   : > { %v4377_v32 = vpop.f32.mrb[0].mxu0 }
 0x1ed   : > { %v4425_v57 = vadd.f32 %v4377_v32, %v4127_v39  ;;  %v2896_v0 = vpop.f32.mrb[1].mxu0 }
 0x1ee   : > { %v4426_v1 = vadd.f32 %v2896_v0, %v1415_v36 }
 0x1ef   : > { %3088 = vst [vmem:[%s6097_s6 + $0x8] sm:$0xff] %v4425_v57  ;;  %v3157_v6 = vmul.f32 %v4425_v57, %v4425_v57 }
 0x1f0   : > { %3087 = vst [vmem:[%s6097_s6] sm:$0xff] %v4426_v1  ;;  %v3119_v7 = vadd.f32 %v4426_v1, %v4425_v57  ;;  %v3156_v9 = vmul.f32 %v4426_v1, %v4426_v1  ;;  %v4380_v10 = vpop.f32.mrb[2].mxu0 }
 0x1f1   : > { %v4427_v52 = vadd.f32 %v4380_v10, %v4130_v26  ;;  %v2906_v11 = vpop.f32.mrb[3].mxu0 }
 0x1f2   : > { %v3188_v13 = vadd.f32 %v3157_v6, %v3156_v9  ;;  %v4428_v14 = vadd.f32 %v2906_v11, %v1425_v44 }
 0x1f3   : > { %3090 = vst [vmem:[%s6097_s6 + $0x18] sm:$0xff] %v4427_v52  ;;  %v3159_v63 = vmul.f32 %v4427_v52, %v4427_v52 }
 0x1f4   : > { %3089 = vst [vmem:[%s6097_s6 + $0x10] sm:$0xff] %v4428_v14  ;;  %v3120_v15 = vadd.f32 %v4428_v14, %v3119_v7  ;;  %v3158_v17 = vmul.f32 %v4428_v14, %v4428_v14  ;;  %v4383_v18 = vpop.f32.mrb[4].mxu0 }
 0x1f5   : > { %v4429_v47 = vadd.f32 %v4383_v18, %v4133_v24  ;;  %v2916_v30 = vpop.f32.mrb[5].mxu0 }
 0x1f6   : > { %v3189_v34 = vadd.f32 %v3188_v13, %v3158_v17  ;;  %v4430_v48 = vadd.f32 %v2916_v30, %v1435_v50  ;;  %v3121_v61 = vadd.f32 %v4427_v52, %v3120_v15 }
 0x1f7   : > { %3092 = vst [vmem:[%s6097_s6 + $0x28] sm:$0xff] %v4429_v47  ;;  %v3161_v31 = vmul.f32 %v4429_v47, %v4429_v47 }
 0x1f8   : > { %3091 = vst [vmem:[%s6097_s6 + $0x20] sm:$0xff] %v4430_v48  ;;  %v3122_v8 = vadd.f32 %v4430_v48, %v3121_v61  ;;  %v3160_v59 = vmul.f32 %v4430_v48, %v4430_v48  ;;  %v3190_v38 = vadd.f32 %v3189_v34, %v3159_v63  ;;  %v4386_v23 = vpop.f32.mrb[6].mxu0 }
 0x1f9   : > { %v4431_v60 = vadd.f32 %v4386_v23, %v4136_v54  ;;  %v2926_v42 = vpop.f32.mrb[7].mxu0 }
 0x1fa   : > { %v3191_v29 = vadd.f32 %v3190_v38, %v3160_v59  ;;  %v4432_v20 = vadd.f32 %v2926_v42, %v1445_v46  ;;  %v3123_v62 = vadd.f32 %v4429_v47, %v3122_v8 }
 0x1fb   : > { %3094 = vst [vmem:[%s6097_s6 + $0x38] sm:$0xff] %v4431_v60  ;;  %v3163_v25 = vmul.f32 %v4431_v60, %v4431_v60 }
 0x1fc   : > { %3093 = vst [vmem:[%s6097_s6 + $0x30] sm:$0xff] %v4432_v20  ;;  %v3124_v55 = vadd.f32 %v4432_v20, %v3123_v62  ;;  %v3162_v40 = vmul.f32 %v4432_v20, %v4432_v20  ;;  %v3192_v43 = vadd.f32 %v3191_v29, %v3161_v31  ;;  %v4389_v49 = vpop.f32.mrb[8].mxu0 }
 0x1fd   : > { %v4433_v12 = vadd.f32 %v4389_v49, %v4139_v3  ;;  %v2936_v58 = vpop.f32.mrb[9].mxu0 }
 0x1fe   : > { %v3193_v4 = vadd.f32 %v3192_v43, %v3162_v40  ;;  %v4434_v16 = vadd.f32 %v2936_v58, %v1455_v5  ;;  %v3125_v19 = vadd.f32 %v4431_v60, %v3124_v55 }
 0x1ff   : > { %3096 = vst [vmem:[%s6097_s6 + $0x48] sm:$0xff] %v4433_v12  ;;  %v3165_v33 = vmul.f32 %v4433_v12, %v4433_v12 }
 0x200   : > { %3095 = vst [vmem:[%s6097_s6 + $0x40] sm:$0xff] %v4434_v16  ;;  %v3126_v35 = vadd.f32 %v4434_v16, %v3125_v19  ;;  %v3164_v27 = vmul.f32 %v4434_v16, %v4434_v16  ;;  %v3194_v22 = vadd.f32 %v3193_v4, %v3163_v25  ;;  %v4392_v45 = vpop.f32.mrb[10].mxu0 }
 0x201   : > { %v4435_v56 = vadd.f32 %v4392_v45, %v6081_v37  ;;  %v2946_v41 = vpop.f32.mrb[11].mxu0 }
 0x202   : > { %v3195_v39 = vadd.f32 %v3194_v22, %v3164_v27  ;;  %v4436_v36 = vadd.f32 %v2946_v41, %v6083_v53  ;;  %v3127_v26 = vadd.f32 %v4433_v12, %v3126_v35 }
 0x203   : > { %3098 = vst [vmem:[%s6097_s6 + $0x58] sm:$0xff] %v4435_v56  ;;  %v3167_v5 = vmul.f32 %v4435_v56, %v4435_v56 }
 0x204   : > { %3097 = vst [vmem:[%s6097_s6 + $0x50] sm:$0xff] %v4436_v36  ;;  %v3128_v44 = vadd.f32 %v4436_v36, %v3127_v26  ;;  %v3166_v24 = vmul.f32 %v4436_v36, %v4436_v36  ;;  %v3196_v50 = vadd.f32 %v3195_v39, %v3165_v33  ;;  %v4395_v54 = vpop.f32.mrb[12].mxu0 }
 0x205   : > { %v4437_v46 = vadd.f32 %v4395_v54, %v6085_v2  ;;  %v2956_v3 = vpop.f32.mrb[13].mxu0 }
 0x206   : > { %v3197_v32 = vadd.f32 %v3196_v50, %v3166_v24  ;;  %v4438_v37 = vadd.f32 %v2956_v3, %v6087_v21  ;;  %v3129_v57 = vadd.f32 %v4435_v56, %v3128_v44 }
 0x207   : > { %3100 = vst [vmem:[%s6097_s6 + $0x68] sm:$0xff] %v4437_v46  ;;  %v3169_v52 = vmul.f32 %v4437_v46, %v4437_v46 }
 0x208   : > { %3099 = vst [vmem:[%s6097_s6 + $0x60] sm:$0xff] %v4438_v37  ;;  %v3130_v53 = vadd.f32 %v4438_v37, %v3129_v57  ;;  %v3168_v0 = vmul.f32 %v4438_v37, %v4438_v37  ;;  %v3198_v1 = vadd.f32 %v3197_v32, %v3167_v5  ;;  %v4398_v6 = vpop.f32.mrb[14].mxu0  ;;  %v4201_v9 = vpop.f32.mrb[16].mxu1 }
 0x209   : > { %v4439_v7 = vadd.f32 %v4398_v6, %v6089_v28  ;;  %v2966_v10 = vpop.f32.mrb[15].mxu0  ;;  %v1761_v21 = vpop.f32.mrb[17].mxu1 }
 0x20a   : > { %v3199_v2 = vadd.f32 %v3198_v1, %v3168_v0  ;;  %v4440_v11 = vadd.f32 %v2966_v10, %v6091_v51  ;;  %v3131_v13 = vadd.f32 %v4437_v46, %v3130_v53 }
 0x20b   : > { %3102 = vst [vmem:[%s6097_s6 + $0x78] sm:$0xff] %v4439_v7  ;;  %v3171_v28 = vmul.f32 %v4439_v7, %v4439_v7 }
 0x20c   : > { %3101 = vst [vmem:[%s6097_s6 + $0x70] sm:$0xff] %v4440_v11  ;;  %v3132_v14 = vadd.f32 %v4440_v11, %v3131_v13  ;;  %v3170_v15 = vmul.f32 %v4440_v11, %v4440_v11  ;;  %v3200_v17 = vadd.f32 %v3199_v2, %v3169_v52  ;;  %v4401_v18 = vpop.f32.mrb[16].mxu0  ;;  %v4204_v30 = vpop.f32.mrb[18].mxu1 }
 0x20d   : > { %v4441_v47 = vadd.f32 %v4401_v18, %v4201_v9  ;;  %v2976_v63 = vpop.f32.mrb[17].mxu0  ;;  %v1771_v8 = vpop.f32.mrb[19].mxu1 }
 0x20e   : > { %v3201_v34 = vadd.f32 %v3200_v17, %v3170_v15  ;;  %v4442_v48 = vadd.f32 %v2976_v63, %v1761_v21  ;;  %v3133_v61 = vadd.f32 %v4439_v7, %v3132_v14 }
 0x20f   : > { %3104 = vst [vmem:[%s6097_s6 + $0x88] sm:$0xff] %v4441_v47  ;;  %v3173_v29 = vmul.f32 %v4441_v47, %v4441_v47 }
 0x210   : > { %3103 = vst [vmem:[%s6097_s6 + $0x80] sm:$0xff] %v4442_v48  ;;  %v3134_v51 = vadd.f32 %v4442_v48, %v3133_v61  ;;  %v3172_v59 = vmul.f32 %v4442_v48, %v4442_v48  ;;  %v3202_v38 = vadd.f32 %v3201_v34, %v3171_v28  ;;  %v4404_v23 = vpop.f32.mrb[18].mxu0  ;;  %v4207_v42 = vpop.f32.mrb[20].mxu1 }
 0x211   : > { %v4443_v60 = vadd.f32 %v4404_v23, %v4204_v30  ;;  %v2986_v31 = vpop.f32.mrb[19].mxu0  ;;  %v1781_v40 = vpop.f32.mrb[21].mxu1 }
 0x212   : > { %v3203_v20 = vadd.f32 %v3202_v38, %v3172_v59  ;;  %v4444_v62 = vadd.f32 %v2986_v31, %v1771_v8  ;;  %v3135_v55 = vadd.f32 %v4441_v47, %v3134_v51 }
 0x213   : > { %3106 = vst [vmem:[%s6097_s6 + $0x98] sm:$0xff] %v4443_v60  ;;  %v3175_v19 = vmul.f32 %v4443_v60, %v4443_v60 }
 0x214   : > { %3105 = vst [vmem:[%s6097_s6 + $0x90] sm:$0xff] %v4444_v62  ;;  %v3136_v43 = vadd.f32 %v4444_v62, %v3135_v55  ;;  %v3174_v49 = vmul.f32 %v4444_v62, %v4444_v62  ;;  %v3204_v12 = vadd.f32 %v3203_v20, %v3173_v29  ;;  %v4407_v58 = vpop.f32.mrb[20].mxu0  ;;  %v4210_v4 = vpop.f32.mrb[22].mxu1 }
 0x215   : > { %v4445_v25 = vadd.f32 %v4407_v58, %v4207_v42  ;;  %v2996_v16 = vpop.f32.mrb[21].mxu0  ;;  %v1791_v45 = vpop.f32.mrb[23].mxu1 }
 0x216   : > { %v3205_v35 = vadd.f32 %v3204_v12, %v3174_v49  ;;  %v4446_v27 = vadd.f32 %v2996_v16, %v1781_v40  ;;  %v3137_v22 = vadd.f32 %v4443_v60, %v3136_v43 }
 0x217   : > { %3108 = vst [vmem:[%s6097_s6 + $0xa8] sm:$0xff] %v4445_v25  ;;  %v3177_v24 = vmul.f32 %v4445_v25, %v4445_v25 }
 0x218   : > { %3107 = vst [vmem:[%s6097_s6 + $0xa0] sm:$0xff] %v4446_v27  ;;  %v3138_v56 = vadd.f32 %v4446_v27, %v3137_v22  ;;  %v3176_v41 = vmul.f32 %v4446_v27, %v4446_v27  ;;  %v3206_v33 = vadd.f32 %v3205_v35, %v3175_v19  ;;  %v4410_v39 = vpop.f32.mrb[22].mxu0  ;;  %v4213_v26 = vpop.f32.mrb[24].mxu1 }
 0x219   : > { %v4447_v36 = vadd.f32 %v4410_v39, %v4210_v4  ;;  %v3006_v44 = vpop.f32.mrb[23].mxu0  ;;  %v1801_v3 = vpop.f32.mrb[25].mxu1 }
 0x21a   : > { %v3207_v50 = vadd.f32 %v3206_v33, %v3176_v41  ;;  %v4448_v54 = vadd.f32 %v3006_v44, %v1791_v45  ;;  %v3139_v46 = vadd.f32 %v4445_v25, %v3138_v56 }
 0x21b   : > { %3110 = vst [vmem:[%s6097_s6 + $0xb8] sm:$0xff] %v4447_v36  ;;  %v3179_v6 = vmul.f32 %v4447_v36, %v4447_v36 }
 0x21c   : > { %3109 = vst [vmem:[%s6097_s6 + $0xb0] sm:$0xff] %v4448_v54  ;;  %v3140_v5 = vadd.f32 %v4448_v54, %v3139_v46  ;;  %v3178_v32 = vmul.f32 %v4448_v54, %v4448_v54  ;;  %v3208_v37 = vadd.f32 %v3207_v50, %v3177_v24  ;;  %v4413_v57 = vpop.f32.mrb[24].mxu0  ;;  %v4216_v0 = vpop.f32.mrb[26].mxu1 }
 0x21d   : > { %v4449_v53 = vadd.f32 %v4413_v57, %v4213_v26  ;;  %v3016_v1 = vpop.f32.mrb[25].mxu0  ;;  %v1811_v52 = vpop.f32.mrb[27].mxu1 }
 0x21e   : > { %v3209_v7 = vadd.f32 %v3208_v37, %v3178_v32  ;;  %v4450_v9 = vadd.f32 %v3016_v1, %v1801_v3  ;;  %v3141_v10 = vadd.f32 %v4447_v36, %v3140_v5 }
 0x21f   : > { %3112 = vst [vmem:[%s6097_s6 + $0xc8] sm:$0xff] %v4449_v53  ;;  %v3181_v18 = vmul.f32 %v4449_v53, %v4449_v53 }
 0x220   : > { %3111 = vst [vmem:[%s6097_s6 + $0xc0] sm:$0xff] %v4450_v9  ;;  %v3142_v2 = vadd.f32 %v4450_v9, %v3141_v10  ;;  %v3180_v11 = vmul.f32 %v4450_v9, %v4450_v9  ;;  %v3210_v13 = vadd.f32 %v3209_v7, %v3179_v6  ;;  %v4416_v21 = vpop.f32.mrb[26].mxu0  ;;  %v4219_v15 = vpop.f32.mrb[28].mxu1 }
 0x221   : > { %v4451_v14 = vadd.f32 %v4416_v21, %v4216_v0  ;;  %v3026_v17 = vpop.f32.mrb[27].mxu0  ;;  %v1821_v28 = vpop.f32.mrb[29].mxu1 }
 0x222   : > { %v3211_v47 = vadd.f32 %v3210_v13, %v3180_v11  ;;  %v4452_v30 = vadd.f32 %v3026_v17, %v1811_v52  ;;  %v3143_v63 = vadd.f32 %v4449_v53, %v3142_v2 }
 0x223   : > { %3114 = vst [vmem:[%s6097_s6 + $0xd8] sm:$0xff] %v4451_v14  ;;  %v3183_v23 = vmul.f32 %v4451_v14, %v4451_v14 }
 0x224   : > { %3113 = vst [vmem:[%s6097_s6 + $0xd0] sm:$0xff] %v4452_v30  ;;  %v3144_v34 = vadd.f32 %v4452_v30, %v3143_v63  ;;  %v3182_v48 = vmul.f32 %v4452_v30, %v4452_v30  ;;  %v3212_v61 = vadd.f32 %v3211_v47, %v3181_v18  ;;  %v4419_v8 = vpop.f32.mrb[28].mxu0  ;;  %v4222_v59 = vpop.f32.mrb[30].mxu1 }
 0x225   : > { %v4453_v51 = vadd.f32 %v4419_v8, %v4219_v15  ;;  %v3036_v38 = vpop.f32.mrb[29].mxu0  ;;  %v1831_v29 = vpop.f32.mrb[31].mxu1 }
 0x226   : > { %v3213_v60 = vadd.f32 %v3212_v61, %v3182_v48  ;;  %v4454_v42 = vadd.f32 %v3036_v38, %v1821_v28  ;;  %v3145_v31 = vadd.f32 %v4451_v14, %v3144_v34 }
 0x227   : > { %3116 = vst [vmem:[%s6097_s6 + $0xe8] sm:$0xff] %v4453_v51  ;;  %v3185_v12 = vmul.f32 %v4453_v51, %v4453_v51 }
 0x228   : > { %3115 = vst [vmem:[%s6097_s6 + $0xe0] sm:$0xff] %v4454_v42  ;;  %v3146_v20 = vadd.f32 %v4454_v42, %v3145_v31  ;;  %v3184_v62 = vmul.f32 %v4454_v42, %v4454_v42  ;;  %v3214_v55 = vadd.f32 %v3213_v60, %v3183_v23  ;;  %v4422_v40 = vpop.f32.mrb[30].mxu0 }
 0x229   : > { %v4455_v43 = vadd.f32 %v4422_v40, %v4222_v59  ;;  %v3046_v49 = vpop.f32.mrb[31].mxu0 }
 0x22a   : > { %v3215_v58 = vadd.f32 %v3214_v55, %v3184_v62  ;;  %v4456_v25 = vadd.f32 %v3046_v49, %v1831_v29  ;;  %v3147_v4 = vadd.f32 %v4453_v51, %v3146_v20 }
 0x22b   : > { %3118 = vst [vmem:[%s6097_s6 + $0xf8] sm:$0xff] %v4455_v43 }
 0x22c   : > { %3117 = vst [vmem:[%s6097_s6 + $0xf0] sm:$0xff] %v4456_v25  ;;  %v3148_v16 = vadd.f32 %v4456_v25, %v3147_v4  ;;  %v3186_v19 = vmul.f32 %v4456_v25, %v4456_v25  ;;  %v3216_v35 = vadd.f32 %v3215_v58, %v3185_v12 }
 0x22d   : > { %4742 = shalt.err (!%p4739_p3)
}
 0x22e   : > { %s4743_s26 = scalar_lea.hbm %s6140_s11, 4096  ;;  %s4747_s29 = scalar_lea.hbm %s6220_s2, 8192 }
 0x22f   : > { %p4744_p4 = scmp.ne.s32.totalorder %s6140_s11, %s4743_s26  ;;  %p4748_p9 = scmp.lt.u32.totalorder %s6140_s11, %s6220_s2 }
 0x230   : > { %p4749_p10 = scmp.lt.u32.totalorder %s4747_s29, %s4743_s26  ;;  %p4751_p12 = scmp.lt.u32.totalorder %s4743_s26, %s6140_s11 }
 0x231   : > { %p4745_p7 = pnand %p4744_p4, %p4888_p5 }
 0x232   : > { %p4750_p11 = por %p4749_p10, %p4748_p9 }
 0x233   : > { %p4746_p8 = pneg %p4745_p7 }
 0x234   : > { %p4752_p13 = por %p4751_p12, %p4750_p11 }
 0x236   : > { %p4753_p0 = pnand %p4752_p13, %p4746_p8 }
 0x238   : > { %4756 = shalt.err (!%p4753_p0)
}
 0x239   : > { %s4827_s6 = smov 128   ;;  %s4828_s7 = smov 8   ;;  %v3187_v27 = vmul.f32 %v4455_v43, %v4455_v43  ;;  %v3149_v22 = vadd.f32 %v4455_v43, %v3148_v16  ;;  %v3217_v45 = vadd.f32 %v3216_v35, %v3186_v19  ;;  %vm3225_vm6 = vcmask 1040384  }
 0x23a   : > { %4681 = dma.vmem_to_hbm [thread:$0]  (%p4888_p5), %s6142_s8, 4096, %s6140_s11, %s3229_s17, %s4827_s6, %s4827_s6, %s4828_s7  }
 0x23b   : > { %v3150_v56 = vrot.slane %v3149_v22, 4  ;;  %v3218_v41 = vadd.f32 %v3217_v45, %v3187_v27  ;;  %s3359_s9 = sshll.u32 %s6094_s4, 1  ;;  %s3671_s10 = sshll.u32 %s4871_s16, 5 }
 0x23c   : > { %s174_s8 = scalar_lea.vmem [#allocation5], %s3359_s9  ;;  %s6175_s20 = scalar_lea.hbm %s6221_s3, %s3671_s10 }
 0x23d   : > { %v3151_v33 = vadd.f32 %v3150_v56, %v3149_v22  ;;  %v3219_v39 = vrot.slane %v3218_v41, 4  ;;  %s3263_s11 = sshll.u32 %s174_s8, 4  ;;  %s3234_s24 = scalar_lea.sflag [#allocation6], %s6094_s4  ;;  %s6177_s11 = int_to_ptr.vmem [resolvable:$true] %s3263_s11 }
 0x23e   : > { %s4757_s25 = scalar_lea.vmem %s6177_s11, 32  ;;  %s4829_s16 = smov [#allocation5]  }
 0x23f   : > { %v3152_v36 = vrot.slane %v3151_v33, 2  ;;  %v3220_v26 = vadd.f32 %v3219_v39, %v3218_v41  ;;  %p4758_p1 = scmp.ne.s32.totalorder %s6177_s11, %s4757_s25  ;;  %s4761_s26 = sshll.u32 %s4829_s16, 4  ;;  %s4762_s26 = int_to_ptr.vmem [resolvable:$false] %s4761_s26 }
 0x240   : > { %s4763_s27 = scalar_lea.vmem %s4762_s26, 64  ;;  %p4764_p4 = scmp.lt.s32.totalorder %s6177_s11, %s4762_s26 }
 0x241   : > { %v3153_v44 = vadd.f32 %v3152_v36, %v3151_v33  ;;  %v3221_v24 = vrot.slane %v3220_v26, 2  ;;  %p4759_p2 = pnand %p4758_p1, %p4888_p5  ;;  %p4765_p7 = scmp.lt.s32.totalorder %s4763_s27, %s4757_s25 }
 0x243   : > { %v3154_v50 = vrot.slane %v3153_v44, 1  ;;  %v3222_v54 = vadd.f32 %v3221_v24, %v3220_v26  ;;  %p4760_p3 = pneg %p4759_p2  ;;  %p4766_p8 = por %p4765_p7, %p4764_p4 }
 0x245   : > { %v3223_v46 = vrot.slane %v3222_v54, 1  ;;  %v3155_v3 = vadd.f32 %v3154_v50, %v3153_v44  ;;  %p4767_p9 = pnand %p4766_p8, %p4760_p3 }
 0x247   : > { %v3224_v5 = vadd.f32 %v3223_v46, %v3222_v54 }
 0x249   : > { %v3226_v32 = vsel %vm3225_vm6, %v3155_v3, %v3224_v5 }
 0x24a   : > { %3227 = vst [vmem:[%s174_s8] sm:$0x3] %v3226_v32 }
 0x24b   : > { %4770 = shalt.err (!%p4767_p9)
}
 0x24c   : > { %s4771_s4 = scalar_lea.hbm %s6175_s20, 32  ;;  %s4775_s30 = scalar_lea.hbm %s6221_s3, 64 }
 0x24d   : > { %p4772_p10 = scmp.ne.s32.totalorder %s6175_s20, %s4771_s4  ;;  %p4776_p13 = scmp.lt.u32.totalorder %s6175_s20, %s6221_s3 }
 0x24e   : > { %p4777_p0 = scmp.lt.u32.totalorder %s4775_s30, %s4771_s4  ;;  %p4779_p2 = scmp.lt.u32.totalorder %s4771_s4, %s6175_s20 }
 0x24f   : > { %p4773_p11 = pnand %p4772_p10, %p4888_p5 }
 0x250   : > { %p4778_p1 = por %p4777_p0, %p4776_p13 }
 0x251   : > { %p4774_p12 = pneg %p4773_p11 }
 0x252   : > { %p4780_p3 = por %p4779_p2, %p4778_p1 }
 0x254   : > { %p4781_p4 = pnand %p4780_p3, %p4774_p12 }
 0x256   : > { %4784 = shalt.err (!%p4781_p4)
}
 0x257   : > { %4682 = dma.vmem_to_hbm [thread:$0]  (%p4888_p5), %s6177_s11, 32, %s6175_s20, %s3234_s24  }
 0x258 PF: > { %p4692_p7 = scmp.ge.s32.totalorder %s4823_s15, 2  ;;  %s3275_s7 = sand.u32 1, %s4811_s12  }
 0x259   : > { %s3276_s9 = scalar_lea.sflag [#allocation4], %s3275_s7 }
 0x25a   : > { %p4686_p8 = pnand %p4692_p7, %p4892_p6 }
 0x25c   : > { %4802 = dma.done.wait (!%p4686_p8), %s3276_s9, 4096  }
 0x25d   : > { %4804 = vsyncadd (!%p4686_p8), %s3276_s9, 4294963200  ;;  %s3285_s10 = scalar_lea.sflag [#allocation6], %s3275_s7 }
 0x25e   : > { %4806 = dma.done.wait (!%p4686_p8), %s3285_s10, 32  }
 0x25f   : > { %4808 = vsyncadd (!%p4686_p8), %s3285_s10, 4294967264  ;;  %p17_p5 = scmp.ge.s32.totalorder %s4875_s18, 4   ;;  %s6349_s12 = smov %s4815_s13 }
 0x260   : > { %s6350_s13 = smov %s4819_s14  ;;  %s6351_s14 = smov %s4886_s21 }
 0x261   : > { %s6352_s15 = smov %s4875_s18  ;;  %19 = sbr.rel (!%p17_p5) target bundleno = 5 (0x5), region = 90 }
 0x268   :  { %3290 = vsyncpa [#allocation4], 1 }
 0x269   :  { %3292 = vsyncpa [#allocation4 + $0x1], 1 }
 0x26a   :  { %3293 = vsyncpa [#allocation6], 1 }
 0x26b   :  { %3295 = vsyncpa [#allocation6 + $0x1], 1 }

</bundles_post_ra>
